<compile_context>
chip_gen: v7x
topology: tpu7x:2x2x1
jax: 0.10.0
libtpu: 0.0.40
codegen_flags: <defaults>
</compile_context>

<pallas_src>
import jax
import jax.numpy as jnp
from jax.experimental import pallas as pl
from jax.experimental.pallas import tpu as pltpu


def _rup(x, m):
    return ((x + m - 1) // m) * m


# ----------------------------------------------------------------------------
# Fused per-step kernel: attention + GRU (at j==0) + vocab-tile projection
# ----------------------------------------------------------------------------
def fused_decoder_kernel(
    emb_ref,      # [Bp, Ep]         bf16  embedded input tokens
    hid_ref,      # [Bp, Hdp]        f32   previous decoder hidden
    enc_ref,      # [Bp, S, He2p]    bf16  encoder outputs (batch-major, padded)
    eenc_ref,     # [Bp, S, Hdp]     bf16  precomputed enc @ W_ae (hoisted)
    w_ah_ref,     # [Hdp, Hdp]       bf16  attention weight, hidden slice
    b_a_ref,      # [1, Hdp]         f32
    v_ref,        # [1, Hdp]         f32   attention "v" vector
    w_ih_ref,     # [Ep+He2p, 3Hdp]  bf16  packed GRU input weights (emb | weighted)
    b_ih_ref,     # [1, 3Hdp]        f32
    w_hh_ref,     # [Hdp, 3Hdp]      bf16
    b_hh_ref,     # [1, 3Hdp]        f32
    w_fc_ref,     # [Kp, TO]         bf16  vocab-projection weight tile j
    b_fc_ref,     # [1, TO]          f32   vocab bias tile j (padded cols = -1e30)
    hid_out_ref,  # [Bp, Hdp]        f32   new hidden (written at j == 0)
    pred_ref,     # [Bp, TO]         f32   logits tile j
    feat_ref,     # [Bp, Kp]         bf16  VMEM scratch: [h_new | weighted | emb]
):
    j = pl.program_id(0)

    @pl.when(j == 0)
    def _attention_and_gru():
        emb = emb_ref[...]                          # bf16 [Bp, Ep]
        hid = hid_ref[...]                          # f32  [Bp, Hdp]
        enc = enc_ref[...]                          # bf16 [Bp, S, He2p]
        e_enc = eenc_ref[...].astype(jnp.float32)   # f32  [Bp, S, Hdp]
        Hdp = hid.shape[-1]
        Ep = emb.shape[-1]
        He2p = enc.shape[-1]
        hid_bf = hid.astype(jnp.bfloat16)

        # ---------------- Attention (enc-side projection hoisted) ----------------
        e_hid = jnp.dot(hid_bf, w_ah_ref[...],
                        preferred_element_type=jnp.float32)            # [Bp, Hdp]
        energy = jnp.tanh(e_enc + e_hid[:, None, :]
                          + b_a_ref[...].reshape(1, 1, Hdp))            # [Bp, S, Hdp]

        # Scores stay [Bp, S, 1]: softmax along the sublane axis (no relayout).
        scores = jnp.sum(energy * v_ref[...].reshape(1, 1, Hdp),
                         axis=-1, keepdims=True)                        # [Bp, S, 1]
        scores = scores - jnp.max(scores, axis=1, keepdims=True)
        exps = jnp.exp(scores)                                          # [Bp, S, 1]
        denom = jnp.sum(exps, axis=1)                                   # [Bp, 1]

        # Weighted context: bf16 multiply, f32 reduce, deferred normalization.
        prod = exps.astype(jnp.bfloat16) * enc                          # bf16 [Bp,S,He2p]
        weighted_un = jnp.sum(prod.astype(jnp.float32), axis=1)         # f32  [Bp,He2p]
        weighted = weighted_un * pl.reciprocal(denom, approx=True)
        weighted_bf = weighted.astype(jnp.bfloat16)

        # ---------------- GRU cell (PyTorch gate order r, z, n) ----------------
        # Two dots on static 128-aligned row slices of the packed W_ih
        # (replaces the lane-axis concatenate + single dot; no relayout copy).
        gi = (jnp.dot(emb, w_ih_ref[0:Ep, :],
                      preferred_element_type=jnp.float32)
              + jnp.dot(weighted_bf, w_ih_ref[Ep:Ep + He2p, :],
                        preferred_element_type=jnp.float32)
              + b_ih_ref[...])                                          # [Bp, 3Hdp]
        gh = (jnp.dot(hid_bf, w_hh_ref[...],
                      preferred_element_type=jnp.float32)
              + b_hh_ref[...])                                          # [Bp, 3Hdp]

        # Hdp is a multiple of 128, so gate slices are lane-tile aligned (free).
        r = jax.nn.sigmoid(gi[:, 0 * Hdp:1 * Hdp] + gh[:, 0 * Hdp:1 * Hdp])
        z = jax.nn.sigmoid(gi[:, 1 * Hdp:2 * Hdp] + gh[:, 1 * Hdp:2 * Hdp])
        n = jnp.tanh(gi[:, 2 * Hdp:3 * Hdp] + r * gh[:, 2 * Hdp:3 * Hdp])
        h_new = (1.0 - z) * n + z * hid                                 # [Bp, Hdp] f32

        hid_out_ref[...] = h_new
        # fc feature slab at 128-aligned lane offsets: cat(outputs, weighted, emb)
        feat_ref[:, 0:Hdp] = h_new.astype(jnp.bfloat16)
        feat_ref[:, Hdp:Hdp + He2p] = weighted_bf
        feat_ref[:, Hdp + He2p:Hdp + He2p + Ep] = emb

    # ---- Vocab projection tile j (every grid step, from the VMEM scratch) ----
    pred_ref[...] = (
        jnp.dot(feat_ref[...], w_fc_ref[...], preferred_element_type=jnp.float32)
        + b_fc_ref[...]
    )


# ----------------------------------------------------------------------------
# Parameter construction / packing
# ----------------------------------------------------------------------------
def make_raw_params(key, cfg):
    """Logical-size f32 params, stored [in_features, out_features]."""
    E = cfg["emb_sz"]
    He2 = 2 * cfg["enc_hid_dim"]
    Hd = cfg["dec_hid_dim"]
    O = cfg["out_sz"]
    ks = jax.random.split(key, 12)
    init = lambda k, s: 0.1 * jax.random.normal(k, s, dtype=jnp.float32)
    return {
        "emb":  init(ks[0], (O, E)),              # embedding table
        # Attention Linear(2He+Hd -> Hd), cat order (hidden, enc) -> split weights
        "w_ah": init(ks[1], (Hd, Hd)),
        "w_ae": init(ks[2], (He2, Hd)),
        "b_a":  init(ks[3], (1, Hd)),
        "v":    init(ks[4], (1, Hd)),             # Linear(Hd -> 1, bias=False)
        # GRU(E+2He -> Hd): input order (embedded, weighted); gates (r, z, n)
        "w_ih": init(ks[5], (E + He2, 3 * Hd)),
        "b_ih": init(ks[6], (1, 3 * Hd)),
        "w_hh": init(ks[7], (Hd, 3 * Hd)),
        "b_hh": init(ks[8], (1, 3 * Hd)),
        # fc_out(Hd+2He+E -> O): input order (outputs, weighted, embedded)
        "w_fc": init(ks[9], (Hd + He2 + E, O)),
        "b_fc": init(ks[10], (1, O)),
    }


def _choose_vocab_tile(O, Kp, vmem_budget_bytes=12 << 20, nominal_bp=8):
    """Largest lane-dense vocab tile whose double-buffered stream fits a budget."""
    Op0 = _rup(O, 128)
    cap = 128
    for cand in (4096, 2048, 1024, 512, 256, 128):
        need = 2 * (Kp * cand * 2 + cand * 4 + nominal_bp * cand * 4)
        if need <= vmem_budget_bytes:
            cap = cand
            break
    TO = min(cap, Op0)            # both multiples of 128
    Op = _rup(Op0, TO)            # pad vocab up so TO divides Op
    return TO, Op


def pack_params(raw, cfg):
    """Zero-pad to (8,128)-friendly sizes, fuse split matmuls, cast weights to bf16."""
    E = cfg["emb_sz"]
    He2 = 2 * cfg["enc_hid_dim"]
    Hd = cfg["dec_hid_dim"]
    O = cfg["out_sz"]
    Ep, He2p, Hdp = _rup(E, 128), _rup(He2, 128), _rup(Hd, 128)
    Kp = Hdp + He2p + Ep
    TO, Op = _choose_vocab_tile(O, Kp)

    def padmat(m, rp, cp):
        r, c = m.shape
        return jnp.pad(m, ((0, rp - r), (0, cp - c)))

    def pack_gate_cols(m):  # [in, 3*Hd] -> [in, 3*Hdp], each gate block padded
        return jnp.concatenate(
            [jnp.pad(m[:, g * Hd:(g + 1) * Hd], ((0, 0), (0, Hdp - Hd)))
             for g in range(3)], axis=1)

    # GRU input weights: rows (emb | weighted) padded to (Ep | He2p)
    w_ih_g = pack_gate_cols(raw["w_ih"])                 # [E+He2, 3Hdp]
    w_ih_p = jnp.zeros((Ep + He2p, 3 * Hdp), jnp.float32)
    w_ih_p = w_ih_p.at[:E, :].set(w_ih_g[:E])
    w_ih_p = w_ih_p.at[Ep:Ep + He2, :].set(w_ih_g[E:])

    w_hh_p = jnp.pad(pack_gate_cols(raw["w_hh"]), ((0, Hdp - Hd), (0, 0)))

    # fc weights: rows (h_new | weighted | emb) placed at 128-aligned offsets
    w_fc_p = jnp.zeros((Kp, Op), jnp.float32)
    w_fc_p = w_fc_p.at[:Hd, :O].set(raw["w_fc"][:Hd])
    w_fc_p = w_fc_p.at[Hdp:Hdp + He2, :O].set(raw["w_fc"][Hd:Hd + He2])
    w_fc_p = w_fc_p.at[Hdp + He2p:Hdp + He2p + E, :O].set(raw["w_fc"][Hd + He2:])

    # Padded vocab columns get a huge negative bias so padded logits never win
    # an argmax/softmax taken over the padded width (we no longer slice per step).
    b_fc_p = jnp.full((1, Op), -1e30, jnp.float32)
    b_fc_p = b_fc_p.at[:, :O].set(raw["b_fc"][0])

    return {
        "dims": dict(E=E, He2=He2, Hd=Hd, O=O, Ep=Ep, He2p=He2p, Hdp=Hdp,
                     Op=Op, Kp=Kp, TO=TO),
        "emb":  jnp.pad(raw["emb"], ((0, 0), (0, Ep - E))).astype(jnp.bfloat16),
        "w_ah": padmat(raw["w_ah"], Hdp, Hdp).astype(jnp.bfloat16),
        "w_ae": padmat(raw["w_ae"], He2p, Hdp).astype(jnp.bfloat16),
        "b_a":  padmat(raw["b_a"], 1, Hdp),
        "v":    padmat(raw["v"], 1, Hdp),
        "w_ih": w_ih_p.astype(jnp.bfloat16),
        "b_ih": pack_gate_cols(raw["b_ih"]),
        "w_hh": w_hh_p.astype(jnp.bfloat16),
        "b_hh": pack_gate_cols(raw["b_hh"]),
        "w_fc": w_fc_p.astype(jnp.bfloat16),
        "b_fc": b_fc_p,
    }


# ----------------------------------------------------------------------------
# Per-sequence preparation (hoisted out of the decode step)
# ----------------------------------------------------------------------------
def prepare_encoder(enc_outs, packed):
    """enc_outs: [S, B, 2He] (PyTorch layout). Computed ONCE per sequence."""
    d = packed["dims"]
    S, B, He2 = enc_outs.shape
    Bp = _rup(B, 8)
    enc_b = jnp.transpose(enc_outs, (1, 0, 2))                         # [B, S, 2He]
    enc_b = jnp.pad(enc_b, ((0, Bp - B), (0, 0), (0, d["He2p"] - He2)))
    # Hoisted encoder-side attention projection (the largest per-step matmul).
    e_enc = jnp.einsum("bse,eh->bsh", enc_b,
                       packed["w_ae"].astype(jnp.float32),
                       preferred_element_type=jnp.float32)             # [Bp, S, Hdp]
    return enc_b.astype(jnp.bfloat16), e_enc.astype(jnp.bfloat16)


# ----------------------------------------------------------------------------
# VMEM / cost bookkeeping for the fused call
# ----------------------------------------------------------------------------
def _vmem_limit_bytes(Bp, S, d):
    Ep, He2p, Hdp, Kp, TO = d["Ep"], d["He2p"], d["Hdp"], d["Kp"], d["TO"]
    fixed = (Bp * Ep * 2 + Bp * Hdp * 4 + Bp * S * He2p * 2 + Bp * S * Hdp * 2
             + Hdp * Hdp * 2 + 2 * Hdp * 4
             + (Ep + He2p) * 3 * Hdp * 2 + 3 * Hdp * 4
             + Hdp * 3 * Hdp * 2 + 3 * Hdp * 4
             + Bp * Kp * 2 + Bp * Hdp * 4)
    streamed = 2 * (Kp * TO * 2 + TO * 4 + Bp * TO * 4)   # double-buffered tiles
    est = 2 * (fixed + streamed) + (8 << 20)              # headroom for f32 temps
    # Stay within the tightest generation's physical VMEM (v7x: 64 MiB).
    return int(min(64 << 20, max(32 << 20, est)))


def _cost_estimate(Bp, S, d):
    Ep, He2p, Hdp, Kp, Op = d["Ep"], d["He2p"], d["Hdp"], d["Kp"], d["Op"]
    flops = (2 * Bp * Hdp * Hdp
             + 2 * Bp * S * He2p
             + 2 * Bp * (Ep + He2p + Hdp) * 3 * Hdp
             + 2 * Bp * Kp * Op)
    transcendentals = Bp * S * Hdp + Bp * S + 3 * Bp * Hdp + Bp
    bytes_accessed = (Bp * Ep * 2 + Bp * Hdp * 4 + Bp * S * (He2p + Hdp) * 2
                      + Hdp * Hdp * 2 + (Ep + He2p + Hdp) * 3 * Hdp * 2
                      + Kp * Op * 2 + Op * 4
                      + Bp * Hdp * 4 + Bp * Op * 4)
    return pl.CostEstimate(flops=int(flops),
                           transcendentals=int(transcendentals),
                           bytes_accessed=int(bytes_accessed))


# ----------------------------------------------------------------------------
# One decoder step (the per-step hot path) — operates on PADDED state
# ----------------------------------------------------------------------------
def decoder_step(tokens_p, hidden_p, enc_b_p, e_enc_p, packed):
    """
    tokens_p : [Bp] int32            padded token ids (decode-loop carry)
    hidden_p : [Bp, Hdp] f32         padded previous hidden (decode-loop carry)
    enc_b_p  : [Bp, S, He2p] bf16,  e_enc_p : [Bp, S, Hdp] bf16 (prepare_encoder)
    returns  : (pred_p [Bp, Op] f32, h_new_p [Bp, Hdp] f32)  -- still padded
    """
    d = packed["dims"]
    Bp = hidden_p.shape[0]
    S = enc_b_p.shape[1]
    Ep, He2p, Hdp, Kp, Op, TO = d["Ep"], d["He2p"], d["Hdp"], d["Kp"], d["Op"], d["TO"]

    emb_p = jnp.take(packed["emb"], tokens_p, axis=0)                  # [Bp, Ep] bf16

    def full(shape):
        return pl.BlockSpec(shape, lambda j, _s=shape: (0,) * len(_s))

    in_specs = [
        full((Bp, Ep)),                               # emb
        full((Bp, Hdp)),                              # hidden
        full((Bp, S, He2p)),                          # enc
        full((Bp, S, Hdp)),                           # e_enc
        full((Hdp, Hdp)),                             # w_ah
        full((1, Hdp)),                               # b_a
        full((1, Hdp)),                               # v
        full((Ep + He2p, 3 * Hdp)),                   # w_ih
        full((1, 3 * Hdp)),                           # b_ih
        full((Hdp, 3 * Hdp)),                         # w_hh
        full((1, 3 * Hdp)),                           # b_hh
        pl.BlockSpec((Kp, TO), lambda j: (0, j)),     # w_fc tile (streamed)
        pl.BlockSpec((1, TO), lambda j: (0, j)),      # b_fc tile
    ]
    out_specs = (
        pl.BlockSpec((Bp, Hdp), lambda j: (0, 0)),    # h_new (resident; written j==0)
        pl.BlockSpec((Bp, TO), lambda j: (0, j)),     # pred tile (lane-dense)
    )

    h_new_p, pred_p = pl.pallas_call(
        fused_decoder_kernel,
        out_shape=(
            jax.ShapeDtypeStruct((Bp, Hdp), jnp.float32),
            jax.ShapeDtypeStruct((Bp, Op), jnp.float32),
        ),
        grid=(Op // TO,),
        in_specs=in_specs,
        out_specs=out_specs,
        scratch_shapes=[pltpu.VMEM((Bp, Kp), jnp.bfloat16)],
        input_output_aliases={1: 0},   # previous-hidden buffer -> new-hidden output
        compiler_params=pltpu.CompilerParams(
            # 'arbitrary': iteration j==0 initializes the feat scratch and writes
            # h_new, so vocab tiles cannot be sharded across TensorCores.
            dimension_semantics=("arbitrary",),
            vmem_limit_bytes=_vmem_limit_bytes(Bp, S, d),
        ),
        cost_estimate=_cost_estimate(Bp, S, d),
    )(emb_p, hidden_p, enc_b_p, e_enc_p,
      packed["w_ah"], packed["b_a"], packed["v"],
      packed["w_ih"], packed["b_ih"], packed["w_hh"], packed["b_hh"],
      packed["w_fc"], packed["b_fc"])

    return pred_p, h_new_p


# ----------------------------------------------------------------------------
# Pure-JAX reference (mirrors the PyTorch forward) for a sanity check
# ----------------------------------------------------------------------------
def reference_forward(tokens, hidden, enc_outs, raw):
    Hd = hidden.shape[-1]
    emb = raw["emb"][tokens]                                           # [B, E]
    enc_b = jnp.transpose(enc_outs, (1, 0, 2))                         # [B, S, 2He]
    e = jnp.tanh((hidden @ raw["w_ah"])[:, None, :]
                 + jnp.einsum("bse,eh->bsh", enc_b, raw["w_ae"])
                 + raw["b_a"])
    scores = jnp.einsum("bsh,h->bs", e, raw["v"][0])
    a = jax.nn.softmax(scores, axis=-1)
    weighted = jnp.einsum("bs,bse->be", a, enc_b)
    x = jnp.concatenate([emb, weighted], axis=-1)
    gi = x @ raw["w_ih"] + raw["b_ih"]
    gh = hidden @ raw["w_hh"] + raw["b_hh"]
    r = jax.nn.sigmoid(gi[:, :Hd] + gh[:, :Hd])
    z = jax.nn.sigmoid(gi[:, Hd:2 * Hd] + gh[:, Hd:2 * Hd])
    n = jnp.tanh(gi[:, 2 * Hd:] + r * gh[:, 2 * Hd:])
    h_new = (1.0 - z) * n + z * hidden
    pred = jnp.concatenate([h_new, weighted, emb], axis=-1) @ raw["w_fc"] + raw["b_fc"]
    return pred, h_new


# ----------------------------------------------------------------------------
if __name__ == "__main__":
    cfg = dict(out_sz=24, emb_sz=16, enc_hid_dim=16, dec_hid_dim=32, dropout=0.1)
    B, S = 2, 8

    key = jax.random.PRNGKey(0)
    k_par, k_tok, k_hid, k_enc = jax.random.split(key, 4)

    raw = make_raw_params(k_par, cfg)
    packed = pack_params(raw, cfg)
    d = packed["dims"]
    O, Hd = cfg["out_sz"], cfg["dec_hid_dim"]

    tokens = jax.random.randint(k_tok, (B,), 0, cfg["out_sz"], dtype=jnp.int32)
    hidden = jax.random.normal(k_hid, (B, cfg["dec_hid_dim"]), dtype=jnp.float32)
    enc_outs = jax.random.normal(
        k_enc, (S, B, 2 * cfg["enc_hid_dim"]), dtype=jnp.float32)

    # Hoisted per-sequence prep: batch-major padded enc + encoder-side projection.
    enc_b_p, e_enc_p = prepare_encoder(enc_outs, packed)
    Bp = enc_b_p.shape[0]

    # Pad the decode-loop carries ONCE (not per step).
    hidden_p = jnp.pad(hidden, ((0, Bp - B), (0, d["Hdp"] - Hd)))
    tokens_p = jnp.pad(tokens, (0, Bp - B))

    step = jax.jit(lambda tok, hid: decoder_step(tok, hid, enc_b_p, e_enc_p, packed))

    # ---- decode step 1 ----
    pred_p, h_new_p = step(tokens_p, hidden_p)
    jax.block_until_ready((pred_p, h_new_p))

    pred = pred_p[:B, :O]
    h_new = h_new_p[:B, :Hd]
    assert pred.shape == (B, O)
    assert h_new.shape == (B, Hd)
    assert bool(jnp.all(jnp.isfinite(pred))) and bool(jnp.all(jnp.isfinite(h_new)))

    # Loose tolerance: kernel uses bf16 weights + approx reciprocal (f32 accumulate).
    pred_ref, h_ref = reference_forward(tokens, hidden, enc_outs, raw)
    assert float(jnp.max(jnp.abs(pred - pred_ref))) < 5e-2
    assert float(jnp.max(jnp.abs(h_new - h_ref))) < 5e-2

    # ---- decode step 2: greedy token from the padded logits, padded hidden carry ----
    # (padded vocab columns carry a -1e30 bias, so argmax over the padded width is safe)
    tokens2_p = jnp.argmax(pred_p, axis=-1).astype(jnp.int32)          # [Bp]
    pred2_p, h2_p = step(tokens2_p, h_new_p)
    jax.block_until_ready((pred2_p, h2_p))

    pred2 = pred2_p[:B, :O]
    h2 = h2_p[:B, :Hd]
    assert bool(jnp.all(jnp.isfinite(pred2))) and bool(jnp.all(jnp.isfinite(h2)))
    pred2_ref, h2_ref = reference_forward(tokens2_p[:B], h_new, enc_outs, raw)
    assert float(jnp.max(jnp.abs(pred2 - pred2_ref))) < 5e-2
    assert float(jnp.max(jnp.abs(h2 - h2_ref))) < 5e-2

    print("KERNEL_OK")
</pallas_src>

<mosaic_0001>
module attributes {stable_mosaic.version = 11 : i64} {
  func.func @fused_decoder_kernel(%arg0: i32, %arg1: memref<8x128xbf16, #tpu.memory_space<vmem>>, %arg2: memref<8x128xf32, #tpu.memory_space<vmem>>, %arg3: memref<8x8x128xbf16, #tpu.memory_space<vmem>>, %arg4: memref<8x8x128xbf16, #tpu.memory_space<vmem>>, %arg5: memref<128x128xbf16, #tpu.memory_space<vmem>>, %arg6: memref<1x128xf32, #tpu.memory_space<vmem>>, %arg7: memref<1x128xf32, #tpu.memory_space<vmem>>, %arg8: memref<256x384xbf16, #tpu.memory_space<vmem>>, %arg9: memref<1x384xf32, #tpu.memory_space<vmem>>, %arg10: memref<128x384xbf16, #tpu.memory_space<vmem>>, %arg11: memref<1x384xf32, #tpu.memory_space<vmem>>, %arg12: memref<384x128xbf16, #tpu.memory_space<vmem>>, %arg13: memref<1x128xf32, #tpu.memory_space<vmem>>, %arg14: memref<8x128xf32, #tpu.memory_space<vmem>>, %arg15: memref<8x128xf32, #tpu.memory_space<vmem>>, %arg16: memref<8x384xbf16, #tpu.memory_space<vmem>>) attributes {dimension_semantics = [#tpu.dimension_semantics<arbitrary>], iteration_bounds = array<i64: 1>, scalar_prefetch = 0 : i64, scratch_operands = 1 : i64, tpu.core_type = #tpu.core_type<tc>, window_params = [{pipeline_mode = #tpu.pipeline_mode<synchronous>, transform_indices = @transform_0, window_bounds = array<i64: 8, 128>}, {pipeline_mode = #tpu.pipeline_mode<synchronous>, transform_indices = @transform_1, window_bounds = array<i64: 8, 128>}, {pipeline_mode = #tpu.pipeline_mode<synchronous>, transform_indices = @transform_2, window_bounds = array<i64: 8, 8, 128>}, {pipeline_mode = #tpu.pipeline_mode<synchronous>, transform_indices = @transform_3, window_bounds = array<i64: 8, 8, 128>}, {pipeline_mode = #tpu.pipeline_mode<synchronous>, transform_indices = @transform_4, window_bounds = array<i64: 128, 128>}, {pipeline_mode = #tpu.pipeline_mode<synchronous>, transform_indices = @transform_5, window_bounds = array<i64: 1, 128>}, {pipeline_mode = #tpu.pipeline_mode<synchronous>, transform_indices = @transform_6, window_bounds = array<i64: 1, 128>}, {pipeline_mode = #tpu.pipeline_mode<synchronous>, transform_indices = @transform_7, window_bounds = array<i64: 256, 384>}, {pipeline_mode = #tpu.pipeline_mode<synchronous>, transform_indices = @transform_8, window_bounds = array<i64: 1, 384>}, {pipeline_mode = #tpu.pipeline_mode<synchronous>, transform_indices = @transform_9, window_bounds = array<i64: 128, 384>}, {pipeline_mode = #tpu.pipeline_mode<synchronous>, transform_indices = @transform_10, window_bounds = array<i64: 1, 384>}, {transform_indices = @transform_11, window_bounds = array<i64: 384, 128>}, {transform_indices = @transform_12, window_bounds = array<i64: 1, 128>}, {pipeline_mode = #tpu.pipeline_mode<synchronous>, transform_indices = @transform_13, window_bounds = array<i64: 8, 128>}, {transform_indices = @transform_14, window_bounds = array<i64: 8, 128>}]} {
    %c0_i32 = arith.constant 0 : i32
    %0 = arith.cmpi eq, %arg0, %c0_i32 : i32
    %1 = arith.extui %0 : i1 to i32
    %c0_i32_0 = arith.constant 0 : i32
    %2 = arith.cmpi ne, %1, %c0_i32_0 : i32
    scf.if %2 {
      %c0_8 = arith.constant 0 : index
      %c0_9 = arith.constant 0 : index
      %10 = vector.load %arg1[%c0_8, %c0_9] : memref<8x128xbf16, #tpu.memory_space<vmem>>, vector<8x128xbf16>
      %c0_10 = arith.constant 0 : index
      %c0_11 = arith.constant 0 : index
      %11 = vector.load %arg2[%c0_10, %c0_11] : memref<8x128xf32, #tpu.memory_space<vmem>>, vector<8x128xf32>
      %c0_12 = arith.constant 0 : index
      %c0_13 = arith.constant 0 : index
      %c0_14 = arith.constant 0 : index
      %12 = vector.load %arg3[%c0_12, %c0_13, %c0_14] : memref<8x8x128xbf16, #tpu.memory_space<vmem>>, vector<8x8x128xbf16>
      %c0_15 = arith.constant 0 : index
      %c0_16 = arith.constant 0 : index
      %c0_17 = arith.constant 0 : index
      %13 = vector.load %arg4[%c0_15, %c0_16, %c0_17] : memref<8x8x128xbf16, #tpu.memory_space<vmem>>, vector<8x8x128xbf16>
      %14 = arith.extf %13 : vector<8x8x128xbf16> to vector<8x8x128xf32>
      %15 = arith.truncf %11 : vector<8x128xf32> to vector<8x128xbf16>
      %c0_18 = arith.constant 0 : index
      %c0_19 = arith.constant 0 : index
      %16 = vector.load %arg5[%c0_18, %c0_19] : memref<128x128xbf16, #tpu.memory_space<vmem>>, vector<128x128xbf16>
      %cst_20 = arith.constant dense<0.000000e+00> : vector<8x128xf32>
      %17 = tpu.matmul %15, %16, %cst_20 {dimension_numbers = #tpu.dot_dimension_numbers<[1], [0], [0], [1], [0, 0, 1, 1], [], []>} : vector<8x128xbf16>, vector<128x128xbf16>, vector<8x128xf32> -> vector<8x128xf32>
      %18 = vector.shape_cast %17 : vector<8x128xf32> to vector<8x1x128xf32>
      %19 = vector.broadcast %18 : vector<8x1x128xf32> to vector<8x8x128xf32>
      %20 = arith.addf %14, %19 : vector<8x8x128xf32>
      %c0_21 = arith.constant 0 : index
      %c0_22 = arith.constant 0 : index
      %21 = vector.load %arg6[%c0_21, %c0_22] : memref<1x128xf32, #tpu.memory_space<vmem>>, vector<1x128xf32>
      %22 = vector.shape_cast %21 : vector<1x128xf32> to vector<1x1x128xf32>
      %23 = vector.broadcast %22 : vector<1x1x128xf32> to vector<8x8x128xf32>
      %24 = arith.addf %20, %23 : vector<8x8x128xf32>
      %25 = math.tanh %24 : vector<8x8x128xf32>
      %c0_23 = arith.constant 0 : index
      %c0_24 = arith.constant 0 : index
      %26 = vector.load %arg7[%c0_23, %c0_24] : memref<1x128xf32, #tpu.memory_space<vmem>>, vector<1x128xf32>
      %27 = vector.shape_cast %26 : vector<1x128xf32> to vector<1x1x128xf32>
      %28 = vector.broadcast %27 : vector<1x1x128xf32> to vector<8x8x128xf32>
      %29 = arith.mulf %25, %28 : vector<8x8x128xf32>
      %cst_25 = arith.constant dense<0.000000e+00> : vector<8x8xf32>
      %30 = vector.multi_reduction <add>, %29, %cst_25 [2] : vector<8x8x128xf32> to vector<8x8xf32>
      %31 = vector.shape_cast %30 : vector<8x8xf32> to vector<8x8x1xf32>
      %cst_26 = arith.constant dense<0xFF800000> : vector<8x1xf32>
      %32 = vector.multi_reduction <maximumf>, %31, %cst_26 [1] : vector<8x8x1xf32> to vector<8x1xf32>
      %33 = vector.shape_cast %32 : vector<8x1xf32> to vector<8x1x1xf32>
      %34 = vector.broadcast %33 : vector<8x1x1xf32> to vector<8x8x1xf32>
      %35 = arith.subf %31, %34 : vector<8x8x1xf32>
      %36 = math.exp %35 : vector<8x8x1xf32>
      %cst_27 = arith.constant dense<0.000000e+00> : vector<8x1xf32>
      %37 = vector.multi_reduction <add>, %36, %cst_27 [1] : vector<8x8x1xf32> to vector<8x1xf32>
      %38 = arith.truncf %36 : vector<8x8x1xf32> to vector<8x8x1xbf16>
      %39 = vector.broadcast %38 : vector<8x8x1xbf16> to vector<8x8x128xbf16>
      %40 = arith.mulf %39, %12 : vector<8x8x128xbf16>
      %41 = arith.extf %40 : vector<8x8x128xbf16> to vector<8x8x128xf32>
      %cst_28 = arith.constant dense<0.000000e+00> : vector<8x128xf32>
      %42 = vector.multi_reduction <add>, %41, %cst_28 [1] : vector<8x8x128xf32> to vector<8x128xf32>
      %43 = tpu.reciprocal %37 {approx = true} : vector<8x1xf32> -> vector<8x1xf32>
      %44 = vector.broadcast %43 : vector<8x1xf32> to vector<8x128xf32>
      %45 = arith.mulf %42, %44 : vector<8x128xf32>
      %46 = arith.truncf %45 : vector<8x128xf32> to vector<8x128xbf16>
      %c0_29 = arith.constant 0 : index
      %c0_30 = arith.constant 0 : index
      %47 = vector.load %arg8[%c0_29, %c0_30] : memref<256x384xbf16, #tpu.memory_space<vmem>>, vector<128x384xbf16>
      %cst_31 = arith.constant dense<0.000000e+00> : vector<8x384xf32>
      %48 = tpu.matmul %10, %47, %cst_31 {dimension_numbers = #tpu.dot_dimension_numbers<[1], [0], [0], [1], [0, 0, 1, 1], [], []>} : vector<8x128xbf16>, vector<128x384xbf16>, vector<8x384xf32> -> vector<8x384xf32>
      %c128 = arith.constant 128 : index
      %c0_32 = arith.constant 0 : index
      %49 = vector.load %arg8[%c128, %c0_32] : memref<256x384xbf16, #tpu.memory_space<vmem>>, vector<128x384xbf16>
      %cst_33 = arith.constant dense<0.000000e+00> : vector<8x384xf32>
      %50 = tpu.matmul %46, %49, %cst_33 {dimension_numbers = #tpu.dot_dimension_numbers<[1], [0], [0], [1], [0, 0, 1, 1], [], []>} : vector<8x128xbf16>, vector<128x384xbf16>, vector<8x384xf32> -> vector<8x384xf32>
      %51 = arith.addf %48, %50 : vector<8x384xf32>
      %c0_34 = arith.constant 0 : index
      %c0_35 = arith.constant 0 : index
      %52 = vector.load %arg9[%c0_34, %c0_35] : memref<1x384xf32, #tpu.memory_space<vmem>>, vector<1x384xf32>
      %53 = vector.broadcast %52 : vector<1x384xf32> to vector<8x384xf32>
      %54 = arith.addf %51, %53 : vector<8x384xf32>
      %c0_36 = arith.constant 0 : index
      %c0_37 = arith.constant 0 : index
      %55 = vector.load %arg10[%c0_36, %c0_37] : memref<128x384xbf16, #tpu.memory_space<vmem>>, vector<128x384xbf16>
      %cst_38 = arith.constant dense<0.000000e+00> : vector<8x384xf32>
      %56 = tpu.matmul %15, %55, %cst_38 {dimension_numbers = #tpu.dot_dimension_numbers<[1], [0], [0], [1], [0, 0, 1, 1], [], []>} : vector<8x128xbf16>, vector<128x384xbf16>, vector<8x384xf32> -> vector<8x384xf32>
      %c0_39 = arith.constant 0 : index
      %c0_40 = arith.constant 0 : index
      %57 = vector.load %arg11[%c0_39, %c0_40] : memref<1x384xf32, #tpu.memory_space<vmem>>, vector<1x384xf32>
      %58 = vector.broadcast %57 : vector<1x384xf32> to vector<8x384xf32>
      %59 = arith.addf %56, %58 : vector<8x384xf32>
      %60 = vector.extract_strided_slice %54 {offsets = [0, 0], sizes = [8, 128], strides = [1, 1]} : vector<8x384xf32> to vector<8x128xf32>
      %61 = vector.extract_strided_slice %59 {offsets = [0, 0], sizes = [8, 128], strides = [1, 1]} : vector<8x384xf32> to vector<8x128xf32>
      %62 = arith.addf %60, %61 : vector<8x128xf32>
      %63 = arith.negf %62 : vector<8x128xf32>
      %64 = math.exp %63 : vector<8x128xf32>
      %cst_41 = arith.constant 1.000000e+00 : f32
      %65 = vector.broadcast %cst_41 : f32 to vector<8x128xf32>
      %66 = arith.addf %65, %64 : vector<8x128xf32>
      %67 = arith.divf %65, %66 : vector<8x128xf32>
      %68 = vector.extract_strided_slice %54 {offsets = [0, 128], sizes = [8, 128], strides = [1, 1]} : vector<8x384xf32> to vector<8x128xf32>
      %69 = vector.extract_strided_slice %59 {offsets = [0, 128], sizes = [8, 128], strides = [1, 1]} : vector<8x384xf32> to vector<8x128xf32>
      %70 = arith.addf %68, %69 : vector<8x128xf32>
      %71 = arith.negf %70 : vector<8x128xf32>
      %72 = math.exp %71 : vector<8x128xf32>
      %cst_42 = arith.constant 1.000000e+00 : f32
      %73 = vector.broadcast %cst_42 : f32 to vector<8x128xf32>
      %74 = arith.addf %73, %72 : vector<8x128xf32>
      %75 = arith.divf %73, %74 : vector<8x128xf32>
      %76 = vector.extract_strided_slice %54 {offsets = [0, 256], sizes = [8, 128], strides = [1, 1]} : vector<8x384xf32> to vector<8x128xf32>
      %77 = vector.extract_strided_slice %59 {offsets = [0, 256], sizes = [8, 128], strides = [1, 1]} : vector<8x384xf32> to vector<8x128xf32>
      %78 = arith.mulf %67, %77 : vector<8x128xf32>
      %79 = arith.addf %76, %78 : vector<8x128xf32>
      %80 = math.tanh %79 : vector<8x128xf32>
      %cst_43 = arith.constant 1.000000e+00 : f32
      %81 = vector.broadcast %cst_43 : f32 to vector<8x128xf32>
      %82 = arith.subf %81, %75 : vector<8x128xf32>
      %83 = arith.mulf %82, %80 : vector<8x128xf32>
      %84 = arith.mulf %75, %11 : vector<8x128xf32>
      %85 = arith.addf %83, %84 : vector<8x128xf32>
      %c0_44 = arith.constant 0 : index
      %c0_45 = arith.constant 0 : index
      %86 = vector.load %arg14[%c0_44, %c0_45] : memref<8x128xf32, #tpu.memory_space<vmem>>, vector<8x128xf32>
      tpu.vector_store %arg14[%c0_44, %c0_45], %85 {strides = array<i32>} : memref<8x128xf32, #tpu.memory_space<vmem>>, vector<8x128xf32>,
      %87 = arith.truncf %85 : vector<8x128xf32> to vector<8x128xbf16>
      %c0_46 = arith.constant 0 : index
      %c0_47 = arith.constant 0 : index
      %88 = vector.load %arg16[%c0_46, %c0_47] : memref<8x384xbf16, #tpu.memory_space<vmem>>, vector<8x128xbf16>
      tpu.vector_store %arg16[%c0_46, %c0_47], %87 {strides = array<i32>} : memref<8x384xbf16, #tpu.memory_space<vmem>>, vector<8x128xbf16>,
      %c0_48 = arith.constant 0 : index
      %c128_49 = arith.constant 128 : index
      %89 = vector.load %arg16[%c0_48, %c128_49] : memref<8x384xbf16, #tpu.memory_space<vmem>>, vector<8x128xbf16>
      tpu.vector_store %arg16[%c0_48, %c128_49], %46 {strides = array<i32>} : memref<8x384xbf16, #tpu.memory_space<vmem>>, vector<8x128xbf16>,
      %c0_50 = arith.constant 0 : index
      %c256 = arith.constant 256 : index
      %90 = vector.load %arg16[%c0_50, %c256] : memref<8x384xbf16, #tpu.memory_space<vmem>>, vector<8x128xbf16>
      tpu.vector_store %arg16[%c0_50, %c256], %10 {strides = array<i32>} : memref<8x384xbf16, #tpu.memory_space<vmem>>, vector<8x128xbf16>,
    } else {
    }
    %c0 = arith.constant 0 : index
    %c0_1 = arith.constant 0 : index
    %3 = vector.load %arg16[%c0, %c0_1] : memref<8x384xbf16, #tpu.memory_space<vmem>>, vector<8x384xbf16>
    %c0_2 = arith.constant 0 : index
    %c0_3 = arith.constant 0 : index
    %4 = vector.load %arg12[%c0_2, %c0_3] : memref<384x128xbf16, #tpu.memory_space<vmem>>, vector<384x128xbf16>
    %cst = arith.constant dense<0.000000e+00> : vector<8x128xf32>
    %5 = tpu.matmul %3, %4, %cst {dimension_numbers = #tpu.dot_dimension_numbers<[1], [0], [0], [1], [0, 0, 1, 1], [], []>} : vector<8x384xbf16>, vector<384x128xbf16>, vector<8x128xf32> -> vector<8x128xf32>
    %c0_4 = arith.constant 0 : index
    %c0_5 = arith.constant 0 : index
    %6 = vector.load %arg13[%c0_4, %c0_5] : memref<1x128xf32, #tpu.memory_space<vmem>>, vector<1x128xf32>
    %7 = vector.broadcast %6 : vector<1x128xf32> to vector<8x128xf32>
    %8 = arith.addf %5, %7 : vector<8x128xf32>
    %c0_6 = arith.constant 0 : index
    %c0_7 = arith.constant 0 : index
    %9 = vector.load %arg15[%c0_6, %c0_7] : memref<8x128xf32, #tpu.memory_space<vmem>>, vector<8x128xf32>
    tpu.vector_store %arg15[%c0_6, %c0_7], %8 {strides = array<i32>} : memref<8x128xf32, #tpu.memory_space<vmem>>, vector<8x128xf32>,
    return
  }
  func.func @transform_0(%arg0: i32) -> (i32, i32) {
    %c0_i32 = arith.constant 0 : i32
    %c0_i32_0 = arith.constant 0 : i32
    %c0_i32_1 = arith.constant 0 : i32
    return %c0_i32, %c0_i32_0 : i32, i32
  }
  func.func @transform_1(%arg0: i32) -> (i32, i32) {
    %c0_i32 = arith.constant 0 : i32
    %c0_i32_0 = arith.constant 0 : i32
    %c0_i32_1 = arith.constant 0 : i32
    return %c0_i32, %c0_i32_0 : i32, i32
  }
  func.func @transform_2(%arg0: i32) -> (i32, i32, i32) {
    %c0_i32 = arith.constant 0 : i32
    %c0_i32_0 = arith.constant 0 : i32
    %c0_i32_1 = arith.constant 0 : i32
    %c0_i32_2 = arith.constant 0 : i32
    return %c0_i32, %c0_i32_0, %c0_i32_1 : i32, i32, i32
  }
  func.func @transform_3(%arg0: i32) -> (i32, i32, i32) {
    %c0_i32 = arith.constant 0 : i32
    %c0_i32_0 = arith.constant 0 : i32
    %c0_i32_1 = arith.constant 0 : i32
    %c0_i32_2 = arith.constant 0 : i32
    return %c0_i32, %c0_i32_0, %c0_i32_1 : i32, i32, i32
  }
  func.func @transform_4(%arg0: i32) -> (i32, i32) {
    %c0_i32 = arith.constant 0 : i32
    %c0_i32_0 = arith.constant 0 : i32
    %c0_i32_1 = arith.constant 0 : i32
    return %c0_i32, %c0_i32_0 : i32, i32
  }
  func.func @transform_5(%arg0: i32) -> (i32, i32) {
    %c0_i32 = arith.constant 0 : i32
    %c0_i32_0 = arith.constant 0 : i32
    %c0_i32_1 = arith.constant 0 : i32
    return %c0_i32, %c0_i32_0 : i32, i32
  }
  func.func @transform_6(%arg0: i32) -> (i32, i32) {
    %c0_i32 = arith.constant 0 : i32
    %c0_i32_0 = arith.constant 0 : i32
    %c0_i32_1 = arith.constant 0 : i32
    return %c0_i32, %c0_i32_0 : i32, i32
  }
  func.func @transform_7(%arg0: i32) -> (i32, i32) {
    %c0_i32 = arith.constant 0 : i32
    %c0_i32_0 = arith.constant 0 : i32
    %c0_i32_1 = arith.constant 0 : i32
    return %c0_i32, %c0_i32_0 : i32, i32
  }
  func.func @transform_8(%arg0: i32) -> (i32, i32) {
    %c0_i32 = arith.constant 0 : i32
    %c0_i32_0 = arith.constant 0 : i32
    %c0_i32_1 = arith.constant 0 : i32
    return %c0_i32, %c0_i32_0 : i32, i32
  }
  func.func @transform_9(%arg0: i32) -> (i32, i32) {
    %c0_i32 = arith.constant 0 : i32
    %c0_i32_0 = arith.constant 0 : i32
    %c0_i32_1 = arith.constant 0 : i32
    return %c0_i32, %c0_i32_0 : i32, i32
  }
  func.func @transform_10(%arg0: i32) -> (i32, i32) {
    %c0_i32 = arith.constant 0 : i32
    %c0_i32_0 = arith.constant 0 : i32
    %c0_i32_1 = arith.constant 0 : i32
    return %c0_i32, %c0_i32_0 : i32, i32
  }
  func.func @transform_11(%arg0: i32) -> (i32, i32) {
    %c0_i32 = arith.constant 0 : i32
    %c0_i32_0 = arith.constant 0 : i32
    return %c0_i32, %arg0 : i32, i32
  }
  func.func @transform_12(%arg0: i32) -> (i32, i32) {
    %c0_i32 = arith.constant 0 : i32
    %c0_i32_0 = arith.constant 0 : i32
    return %c0_i32, %arg0 : i32, i32
  }
  func.func @transform_13(%arg0: i32) -> (i32, i32) {
    %c0_i32 = arith.constant 0 : i32
    %c0_i32_0 = arith.constant 0 : i32
    %c0_i32_1 = arith.constant 0 : i32
    return %c0_i32, %c0_i32_0 : i32, i32
  }
  func.func @transform_14(%arg0: i32) -> (i32, i32) {
    %c0_i32 = arith.constant 0 : i32
    %c0_i32_0 = arith.constant 0 : i32
    return %c0_i32, %arg0 : i32, i32
  }
}

</mosaic_0001>

<bundles_post_ra>
// kernel: _lambda_.1
= control target key start
LH: loop header
LB: loop body
LE: loop exit
PB: predicated region body
PF: predicated region fallthrough
CT: control target
= control target key end

     0   :  { %v2250_v1 = vmov 0.0   ;;  %vm2251_vm0 = vmmov 0   ;;  %s2798_s0 = inlined_call_operand.vmem [shape: bf16[8,128], index: 0, kind: input, shape index: {}]   ;;  %s2799_s1 = inlined_call_operand.vmem [shape: f32[8,128], index: 1, kind: input, shape index: {}, may-alias: {1,13}]   ;;  %s2800_s2 = inlined_call_operand.vmem [shape: bf16[8,8,128], index: 2, kind: input, shape index: {}]   ;;  %s2801_s3 = inlined_call_operand.vmem [shape: bf16[8,8,128], index: 3, kind: input, shape index: {}]   ;;  %s2802_s4 = inlined_call_operand.vmem [shape: bf16[128,128], index: 4, kind: input, shape index: {}]   ;;  %s2803_s5 = inlined_call_operand.vmem [shape: f32[1,128], index: 5, kind: input, shape index: {}]   ;;  %s2804_s6 = inlined_call_operand.vmem [shape: f32[1,128], index: 6, kind: input, shape index: {}]   ;;  %s2805_s7 = inlined_call_operand.vmem [shape: bf16[256,384], index: 7, kind: input, shape index: {}]   ;;  %s2806_s8 = inlined_call_operand.vmem [shape: f32[1,384], index: 8, kind: input, shape index: {}]   ;;  %s2807_s9 = inlined_call_operand.vmem [shape: bf16[128,384], index: 9, kind: input, shape index: {}]   ;;  %s2808_s10 = inlined_call_operand.vmem [shape: f32[1,384], index: 10, kind: input, shape index: {}]   ;;  %s2809_s11 = inlined_call_operand.vmem [shape: bf16[384,128], index: 11, kind: input, shape index: {}]   ;;  %s2810_s12 = inlined_call_operand.vmem [shape: f32[1,128], index: 12, kind: input, shape index: {}]   ;;  %s2811_s13 = inlined_call_operand.vmem [shape: f32[8,128], index: 13, kind: output, shape index: {0}, may-alias: {1,13}]   ;;  %s2812_s14 = inlined_call_operand.hbm [shape: f32[8,128], index: 14, kind: output, shape index: {1}]  }
   0x1   :  { %v2036_v0 = vld [vmem:[%s2802_s4] sm:$0xff]   ;;  %1919 = vmatprep.subr.bf16.mxu0 %v2250_v1  ;;  %v2037_v2 = vld [vmem:[%s2802_s4 + $0x8] sm:$0xff]   ;;  %1935 = vmatprep.mubr.msk.bf16.mxu0 %vm2251_vm0, %v2250_v1  ;;  %v2038_v3 = vld [vmem:[%s2802_s4 + $0x10] sm:$0xff]  }
   0x2   :  { %1920 = vmatpush3.bf16.msra.mxu0 %v2036_v0  ;;  %v2039_v4 = vld [vmem:[%s2802_s4 + $0x18] sm:$0xff]   ;;  %v2040_v5 = vld [vmem:[%s2802_s4 + $0x20] sm:$0xff]   ;;  %v2041_v6 = vld [vmem:[%s2802_s4 + $0x28] sm:$0xff]  }
   0x3   :  { %1921 = vmatprep.subr.bf16.mxu0 %v2250_v1  ;;  %v2042_v7 = vld [vmem:[%s2802_s4 + $0x30] sm:$0xff]   ;;  %v2043_v8 = vld [vmem:[%s2802_s4 + $0x38] sm:$0xff]   ;;  %v53_v9 = vld [vmem:[%s2799_s1] sm:$0xff] }
   0x4   :  { %v2367_v10 = vpack.c.bf16 %v53_v9, %v53_v9 }
   0x6   :  { %1922 = vmatpush3.bf16.msra.mxu0 %v2037_v2 }
   0x7   :  { %1923 = vmatprep.subr.bf16.mxu0 %v2250_v1 }
   0xa   :  { %1924 = vmatpush3.bf16.msra.mxu0 %v2038_v3 }
   0xb   :  { %1925 = vmatprep.subr.bf16.mxu0 %v2250_v1 }
   0xe   :  { %1926 = vmatpush3.bf16.msra.mxu0 %v2039_v4 }
   0xf   :  { %1927 = vmatprep.subr.bf16.mxu0 %v2250_v1 }
  0x12   :  { %1928 = vmatpush3.bf16.msra.mxu0 %v2040_v5 }
  0x13   :  { %1929 = vmatprep.subr.bf16.mxu0 %v2250_v1 }
  0x16   :  { %1930 = vmatpush3.bf16.msra.mxu0 %v2041_v6 }
  0x17   :  { %1931 = vmatprep.subr.bf16.mxu0 %v2250_v1 }
  0x1a   :  { %1932 = vmatpush3.bf16.msra.mxu0 %v2042_v7 }
  0x1b   :  { %1933 = vmatprep.subr.bf16.mxu0 %v2250_v1 }
  0x1e   :  { %1934 = vmatpush3.bf16.msra.mxu0 %v2043_v8 }
  0x1f   :  { %1939 = vmatprep.subr.bf16.mxu0 %v2250_v1 }
  0x21   :  { %1936 = vmatmul.mubr.bf16.vlgmr.msra.gmra.mrb[0].mxu0 %v2367_v10 }
  0x22   :  { %1955 = vmatprep.mubr.msk.bf16.mxu0 %vm2251_vm0, %v2250_v1 }
  0x23   :  { %20 = vsyncpa [#allocation4], 0  ;;  %v2252_v11 = vmov 1966171168   ;;  %v188_v13 = vlaneseq  ;;  %v1834_v18 = vld [vmem:[%s2801_s3] sm:$0xff]   ;;  %v1849_v19 = vld [vmem:[%s2801_s3 + $0x8] sm:$0xff]  }
  0x24   :  { %v186_v12 = vunpack.c.l.s4 %v2252_v11  ;;  %v1850_v25 = vld [vmem:[%s2801_s3 + $0x10] sm:$0xff]   ;;  %v1835_v30 = vunpack.c.l.bf16 %v1834_v18  ;;  %v1836_v31 = vunpack.c.h.bf16 %v1834_v18  ;;  %v1839_v32 = vunpack.c.l.bf16 %v1849_v19  ;;  %v1851_v33 = vld [vmem:[%s2801_s3 + $0x18] sm:$0xff]   ;;  %v1713_v46 = vld [vmem:[%s2803_s5] ss:$0 sm:$0xff] }
  0x25   :  { %v2373_v15 = vshrl.u32 %v188_v13, 7  ;;  %v1840_v38 = vunpack.c.h.bf16 %v1849_v19  ;;  %v1843_v39 = vunpack.c.l.bf16 %v1850_v25  ;;  %v1844_v40 = vunpack.c.h.bf16 %v1850_v25  ;;  %v1714_v8 = vld [vmem:[%s2804_s6] ss:$0 sm:$0xff] }
  0x26   :  { %v187_v14 = vunpack.c.0.s8 %v186_v12  ;;  %v1847_v47 = vunpack.c.l.bf16 %v1851_v33  ;;  %v1848_v62 = vunpack.c.h.bf16 %v1851_v33  ;;  %v2050_v33 = vld [vmem:[%s2805_s7 + $0xd8] ss:$12 sps:$4 sm:$0xff]   ;;  %vm631_vm1 = vcmask 1041409  }
  0x27   :  { %v2383_v23 = vsub.s32 0, %v2373_v15  ;;  %vm633_vm2 = vcmask 1042434   ;;  %vm635_vm3 = vcmask 1043459   ;;  %vm637_vm4 = vcmask 1044484  }
  0x28   :  { %v190_v16 = vsub.s32 %v187_v14, %v2373_v15  ;;  %vm639_vm5 = vcmask 1045509   ;;  %vm641_vm6 = vcmask 1046534   ;;  %vm643_vm7 = vcmask 1047559  }
  0xf4   :  { %v177_v17 = vpop.f32.mrb[0].mxu0 }
  0xf5   :  { %v184_v20 = vcombine.high %v177_v17, %v177_v17  ;;  %v191_v21 = vrot.slane %v177_v17, %v190_v16  ;;  %v1937_v22 = vpop.f32.mrb[1].mxu0 }
  0xf6   :  { %v180_v24 = vpop.f32.mrb[2].mxu0 }
  0xf7   :  { %v198_v26 = vrot.slane %v184_v20, %v190_v16  ;;  %v199_v27 = vcombine.high %v191_v21, %v191_v21  ;;  %v207_v28 = vrot.slane %v191_v21, %v190_v16  ;;  %v1938_v29 = vpop.f32.mrb[3].mxu0 }
  0xf8   :  { %v2044_v29 = vld [vmem:[%s2805_s7 + $0xc4] ss:$12 sps:$4 sm:$0xff]  }
  0xf9   :  { %v200_v34 = vcombine.high %v198_v26, %v198_v26  ;;  %v214_v35 = vrot.slane %v198_v26, %v190_v16  ;;  %v221_v36 = vrot.slane %v199_v27, %v190_v16  ;;  %v229_v37 = vcombine.high %v207_v28, %v207_v28  ;;  %775 = vmatprep.subr.bf16.mxu1 %v2044_v29 }
  0xfa   :  { %v236_v41 = vrot.slane %v207_v28, %v2383_v23 }
  0xfb   :  { %v228_v42 = vrot.slane %v200_v34, %v190_v16  ;;  %v230_v43 = vcombine.high %v214_v35, %v214_v35  ;;  %v231_v44 = vcombine.high %v221_v36, %v221_v36  ;;  %v240_v45 = vrot.slane %v221_v36, %v2383_v23  ;;  %v2051_v34 = vld [vmem:[%s2805_s7 + $0xe0] ss:$12 sps:$4 sm:$0xff]   ;;  %v2054_v36 = vld [vmem:[%s2805_s7 + $0xf0] ss:$12 sps:$4 sm:$0xff]  }
  0xfc   :  { %v244_v48 = vrot.slane %v229_v37, %v2383_v23  ;;  %v252_v49 = vrot.slane %v214_v35, %v2383_v23  ;;  %v273_v50 = vadd.f32 %v1835_v30, %v236_v41  ;;  %v2046_v30 = vld [vmem:[%s2805_s7 + $0xc0] ss:$12 sps:$4 sm:$0xff]   ;;  %v2055_v37 = vld [vmem:[%s2805_s7 + $0xf8] ss:$12 sps:$4 sm:$0xff]   ;;  %v2059_v41 = vld [vmem:[%s2805_s7 + $0x110] ss:$12 sps:$4 sm:$0xff]  }
  0xfd   :  { %v232_v51 = vcombine.high %v228_v42, %v228_v42  ;;  %v248_v52 = vrot.slane %v231_v44, %v2383_v23  ;;  %v256_v53 = vrot.slane %v228_v42, %v2383_v23  ;;  %v260_v54 = vrot.slane %v230_v43, %v2383_v23  ;;  %776 = vmatpush1.bf16.msra.mxu1 %v2046_v30  ;;  %v2052_v35 = vld [vmem:[%s2805_s7 + $0xf4] ss:$12 sps:$4 sm:$0xff]   ;;  %v2060_v42 = vld [vmem:[%s2805_s7 + $0x124] ss:$12 sps:$4 sm:$0xff]  }
  0xfe   :  { %v274_v55 = vadd.f32 %v1836_v31, %v240_v45  ;;  %v275_v56 = vadd.f32 %v1839_v32, %v244_v48  ;;  %v277_v57 = vadd.f32 %v1843_v39, %v252_v49  ;;  %v288_v58 = vadd.f32 %v1713_v46, %v273_v50  ;;  %v2047_v31 = vld [vmem:[%s2805_s7 + $0xc8] ss:$12 sps:$4 sm:$0xff]   ;;  %v2062_v43 = vld [vmem:[%s2805_s7 + $0x120] ss:$12 sps:$4 sm:$0xff]   ;;  %v2070_v49 = vld [vmem:[%s2805_s7 + $0x150] ss:$12 sps:$4 sm:$0xff]  }
  0xff   :  { %v276_v59 = vadd.f32 %v1840_v38, %v248_v52  ;;  %v278_v63 = vadd.f32 %v1844_v40, %v256_v53  ;;  %v264_v2 = vrot.slane %v232_v51, %v2383_v23  ;;  %v279_v3 = vadd.f32 %v1847_v47, %v260_v54  ;;  %v2048_v32 = vld [vmem:[%s2805_s7 + $0xdc] ss:$12 sps:$4 sm:$0xff]   ;;  %1940 = vmatpush3.bf16.msra.mxu0 %v2047_v31  ;;  %v2056_v38 = vld [vmem:[%s2805_s7 + $0x10c] ss:$12 sps:$4 sm:$0xff]   ;;  %v2068_v48 = vld [vmem:[%s2805_s7 + $0x154] ss:$12 sps:$4 sm:$0xff]  }
 0x100   :  { %v289_v60 = vadd.f32 %v1713_v46, %v274_v55  ;;  %2167 = vtanh.f32 %v288_v58  ;;  %v290_v61 = vadd.f32 %v1713_v46, %v275_v56  ;;  %v292_v0 = vadd.f32 %v1713_v46, %v277_v57  ;;  %777 = vmatprep.subr.bf16.mxu1 %v2048_v32  ;;  %1941 = vmatprep.subr.bf16.mxu0 %v2250_v1  ;;  %v2058_v40 = vld [vmem:[%s2805_s7 + $0x108] ss:$12 sps:$4 sm:$0xff]   ;;  %v2067_v47 = vld [vmem:[%s2805_s7 + $0x140] ss:$12 sps:$4 sm:$0xff]   ;;  %v2071_v50 = vld [vmem:[%s2805_s7 + $0x158] ss:$12 sps:$4 sm:$0xff]  }
 0x101   :  { %v291_v4 = vadd.f32 %v1713_v46, %v276_v59  ;;  %v293_v5 = vadd.f32 %v1713_v46, %v278_v63  ;;  %v280_v6 = vadd.f32 %v1848_v62, %v264_v2  ;;  %v294_v7 = vadd.f32 %v1713_v46, %v279_v3  ;;  %778 = vmatpush1.bf16.msra.mxu1 %v2050_v33  ;;  %v2063_v44 = vld [vmem:[%s2805_s7 + $0x128] ss:$12 sps:$4 sm:$0xff]   ;;  %v2072_v51 = vld [vmem:[%s2805_s7 + $0x16c] ss:$12 sps:$4 sm:$0xff]   ;;  %v2075_v53 = vld [vmem:[%s2805_s7 + $0x170] ss:$12 sps:$4 sm:$0xff]  }
 0x102   :  { %2169 = vtanh.f32 %v289_v60  ;;  %779 = vmatprep.subr.bf16.mxu1 %v2052_v35  ;;  %v2253_v39 = vmov 0   ;;  %v2064_v45 = vld [vmem:[%s2805_s7 + $0x13c] ss:$12 sps:$4 sm:$0xff]   ;;  %v2078_v54 = vld [vmem:[%s2805_s7 + $0x4] ss:$12 sps:$4 sm:$0xff]  }
 0x103   :  { %2171 = vtanh.f32 %v290_v61  ;;  %v295_v11 = vadd.f32 %v1713_v46, %v280_v6  ;;  %1942 = vmatpush3.bf16.msra.mxu0 %v2051_v34  ;;  %807 = vmatprep.mubr.bf16.mxu1 %v2253_v39  ;;  %v2066_v46 = vld [vmem:[%s2805_s7 + $0x138] ss:$12 sps:$4 sm:$0xff]   ;;  %v2074_v52 = vld [vmem:[%s2805_s7 + $0x168] ss:$12 sps:$4 sm:$0xff]   ;;  %v2492_v55 = vld [vmem:[%s2798_s0] sm:$0xf] }
 0x104   :  { %2173 = vtanh.f32 %v292_v0  ;;  %1943 = vmatprep.subr.bf16.mxu0 %v2250_v1  ;;  %1393 = vst [vmem:[#allocation2 + $0x8] sm:$0xf] %v2492_v55 }
 0x105   :  { %2175 = vtanh.f32 %v291_v4  ;;  %780 = vmatpush1.bf16.msra.mxu1 %v2054_v36 }
 0x106   :  { %2177 = vtanh.f32 %v293_v5  ;;  %781 = vmatprep.subr.bf16.mxu1 %v2056_v38 }
 0x107   :  { %2179 = vtanh.f32 %v294_v7  ;;  %1944 = vmatpush3.bf16.msra.mxu0 %v2055_v37 }
 0x108   :  { %2181 = vtanh.f32 %v295_v11  ;;  %1945 = vmatprep.subr.bf16.mxu0 %v2250_v1 }
 0x109   :  { %782 = vmatpush1.bf16.msra.mxu1 %v2058_v40 }
 0x10a   :  { %v2168_v9 = vpop.eup %2167  ;;  %783 = vmatprep.subr.bf16.mxu1 %v2060_v42 }
 0x10b   :  { %v311_v12 = vmul.f32 %v2168_v9, %v1714_v8  ;;  %1946 = vmatpush3.bf16.msra.mxu0 %v2059_v41 }
 0x10c   :  { %v2170_v13 = vpop.eup %2169  ;;  %1947 = vmatprep.subr.bf16.mxu0 %v2250_v1 }
 0x10d   :  { %319 = vadd.xlane.f32.xlu0 %v311_v12  ;;  %v2172_v14 = vpop.eup %2171  ;;  %v312_v18 = vmul.f32 %v2170_v13, %v1714_v8  ;;  %784 = vmatpush1.bf16.msra.mxu1 %v2062_v43 }
 0x10e   :  { %v2174_v16 = vpop.eup %2173  ;;  %v313_v17 = vmul.f32 %v2172_v14, %v1714_v8  ;;  %785 = vmatprep.subr.bf16.mxu1 %v2064_v45 }
 0x10f   :  { %v2176_v19 = vpop.eup %2175  ;;  %v315_v22 = vmul.f32 %v2174_v16, %v1714_v8  ;;  %1948 = vmatpush3.bf16.msra.mxu0 %v2063_v44 }
 0x110   :  { %323 = vadd.xlane.f32.xlu1 %v313_v17  ;;  %v2178_v20 = vpop.eup %2177  ;;  %v314_v21 = vmul.f32 %v2176_v19, %v1714_v8  ;;  %1949 = vmatprep.subr.bf16.mxu0 %v2250_v1 }
 0x111   :  { %321 = vadd.xlane.f32.xlu0 %v312_v18  ;;  %v2180_v24 = vpop.eup %2179  ;;  %v316_v25 = vmul.f32 %v2178_v20, %v1714_v8  ;;  %786 = vmatpush1.bf16.msra.mxu1 %v2066_v46 }
 0x112   :  { %v317_v26 = vmul.f32 %v2180_v24, %v1714_v8  ;;  %v2182_v27 = vpop.eup %2181  ;;  %787 = vmatprep.subr.bf16.mxu1 %v2068_v48 }
 0x113   :  { %v318_v28 = vmul.f32 %v2182_v27, %v1714_v8  ;;  %1950 = vmatpush3.bf16.msra.mxu0 %v2067_v47 }
 0x114   :  { %325 = vadd.xlane.f32.xlu1 %v314_v21  ;;  %1951 = vmatprep.subr.bf16.mxu0 %v2250_v1 }
 0x115   :  { %327 = vadd.xlane.f32.xlu0 %v315_v22  ;;  %788 = vmatpush1.bf16.msra.mxu1 %v2070_v49 }
 0x116   :  { %789 = vmatprep.subr.bf16.mxu1 %v2072_v51 }
 0x117   :  { %1952 = vmatpush3.bf16.msra.mxu0 %v2071_v50 }
 0x118   :  { %329 = vadd.xlane.f32.xlu1 %v316_v25  ;;  %1953 = vmatprep.subr.bf16.mxu0 %v2250_v1 }
 0x119   :  { %331 = vadd.xlane.f32.xlu0 %v317_v26  ;;  %790 = vmatpush1.bf16.msra.mxu1 %v2074_v52 }
 0x11a   :  { %984 = vmatprep.subr.bf16.mxu1 %v2078_v54 }
 0x11b   :  { %1954 = vmatpush3.bf16.msra.mxu0 %v2075_v53 }
 0x11c   :  { %333 = vadd.xlane.f32.xlu1 %v318_v28  ;;  %1959 = vmatprep.subr.bf16.mxu0 %v2250_v1 }
 0x19a   :  { %v320_v56 = vpop.xlane.xlu0 %319 }
 0x19b   :  { %v335_v57 = vrot.slane %v320_v56, 4 }
 0x19d   :  { %v336_v58 = vmax.f32 %v320_v56, %v335_v57  ;;  %v324_v59 = vpop.xlane.xlu1 %323 }
 0x19e   :  { %v322_v60 = vpop.xlane.xlu0 %321  ;;  %v347_v62 = vrot.slane %v324_v59, 4 }
 0x19f   :  { %v337_v61 = vrot.slane %v336_v58, 2  ;;  %v341_v63 = vrot.slane %v322_v60, 4 }
 0x1a0   :  { %v348_v2 = vmax.f32 %v324_v59, %v347_v62 }
 0x1a1   :  { %v338_v0 = vmax.f32 %v336_v58, %v337_v61  ;;  %v342_v3 = vmax.f32 %v322_v60, %v341_v63  ;;  %v326_v4 = vpop.xlane.xlu1 %325 }
 0x1a2   :  { %v328_v5 = vpop.xlane.xlu0 %327  ;;  %v349_v7 = vrot.slane %v348_v2, 2  ;;  %v353_v9 = vrot.slane %v326_v4, 4 }
 0x1a3   :  { %v339_v6 = vrot.slane %v338_v0, 1  ;;  %v343_v8 = vrot.slane %v342_v3, 2  ;;  %v359_v11 = vrot.slane %v328_v5, 4 }
 0x1a4   :  { %v350_v13 = vmax.f32 %v348_v2, %v349_v7  ;;  %v354_v16 = vmax.f32 %v326_v4, %v353_v9 }
 0x1a5   :  { %v340_v12 = vmax.f32 %v338_v0, %v339_v6  ;;  %v344_v14 = vmax.f32 %v342_v3, %v343_v8  ;;  %v360_v17 = vmax.f32 %v328_v5, %v359_v11  ;;  %v330_v18 = vpop.xlane.xlu1 %329  ;;  %v54_v11 = vld [vmem:[%s2800_s2] sm:$0xf] }
 0x1a6   :  { %v332_v19 = vpop.xlane.xlu0 %331  ;;  %v351_v21 = vrot.slane %v350_v13, 1  ;;  %v355_v24 = vrot.slane %v354_v16, 2  ;;  %v365_v26 = vrot.slane %v330_v18, 4 }
 0x1a7   :  { %v383_v20 = vsub.f32 %v320_v56, %v340_v12  ;;  %v345_v22 = vrot.slane %v344_v14, 1  ;;  %v361_v25 = vrot.slane %v360_v17, 2  ;;  %v371_v27 = vrot.slane %v332_v19, 4 }
 0x1a8   :  { %v352_v29 = vmax.f32 %v350_v13, %v351_v21  ;;  %v356_v31 = vmax.f32 %v354_v16, %v355_v24  ;;  %v366_v33 = vmax.f32 %v330_v18, %v365_v26  ;;  %v55_v26 = vld [vmem:[%s2800_s2 + $0x4] sm:$0xf] }
 0x1a9   :  { %v391_v28 = vmul.f32 1.442695, %v383_v20  ;;  %v346_v30 = vmax.f32 %v344_v14, %v345_v22  ;;  %v362_v32 = vmax.f32 %v360_v17, %v361_v25  ;;  %v372_v34 = vmax.f32 %v332_v19, %v371_v27  ;;  %v334_v35 = vpop.xlane.xlu1 %333 }
 0x1aa   :  { %v385_v36 = vsub.f32 %v324_v59, %v352_v29  ;;  %v357_v38 = vrot.slane %v356_v31, 1  ;;  %v367_v41 = vrot.slane %v366_v33, 2  ;;  %v377_v43 = vrot.slane %v334_v35, 4 }
 0x1ab   :  { %2183 = vpow2.f32 %v391_v28  ;;  %v384_v37 = vsub.f32 %v322_v60, %v346_v30  ;;  %v363_v40 = vrot.slane %v362_v32, 1  ;;  %v373_v42 = vrot.slane %v372_v34, 2 }
 0x1ac   :  { %v395_v44 = vmul.f32 1.442695, %v385_v36  ;;  %v358_v46 = vmax.f32 %v356_v31, %v357_v38  ;;  %v368_v48 = vmax.f32 %v366_v33, %v367_v41  ;;  %v378_v50 = vmax.f32 %v334_v35, %v377_v43  ;;  %v57_v36 = vld [vmem:[%s2800_s2 + $0xc] sm:$0xf] }
 0x1ad   :  { %v393_v45 = vmul.f32 1.442695, %v384_v37  ;;  %v364_v47 = vmax.f32 %v362_v32, %v363_v40  ;;  %v374_v49 = vmax.f32 %v372_v34, %v373_v42 }
 0x1ae   :  { %2185 = vpow2.f32 %v395_v44  ;;  %v386_v51 = vsub.f32 %v326_v4, %v358_v46  ;;  %v369_v53 = vrot.slane %v368_v48, 1  ;;  %v379_v57 = vrot.slane %v378_v50, 2 }
 0x1af   :  { %2187 = vpow2.f32 %v393_v45  ;;  %v387_v52 = vsub.f32 %v328_v5, %v364_v47  ;;  %v375_v54 = vrot.slane %v374_v49, 1  ;;  %v58_v47 = vld [vmem:[%s2800_s2 + $0x10] sm:$0xf] }
 0x1b0   :  { %v397_v56 = vmul.f32 1.442695, %v386_v51  ;;  %v370_v59 = vmax.f32 %v368_v48, %v369_v53  ;;  %v380_v61 = vmax.f32 %v378_v50, %v379_v57 }
 0x1b1   :  { %v399_v58 = vmul.f32 1.442695, %v387_v52  ;;  %v376_v60 = vmax.f32 %v374_v49, %v375_v54  ;;  %v59_v54 = vld [vmem:[%s2800_s2 + $0x14] sm:$0xf] }
 0x1b2   :  { %2189 = vpow2.f32 %v397_v56  ;;  %v388_v62 = vsub.f32 %v330_v18, %v370_v59  ;;  %v381_v2 = vrot.slane %v380_v61, 1 }
 0x1b3   :  { %2191 = vpow2.f32 %v399_v58  ;;  %v389_v63 = vsub.f32 %v332_v19, %v376_v60 }
 0x1b4   :  { %v401_v6 = vmul.f32 1.442695, %v388_v62  ;;  %v382_v4 = vmax.f32 %v380_v61, %v381_v2 }
 0x1b5   :  { %v2184_v0 = vpop.eup %2183  ;;  %v403_v7 = vmul.f32 1.442695, %v389_v63 }
 0x1b6   :  { %v407_v3 = vrot.slane %v2184_v0, 4  ;;  %v455_v5 = vpack.c.bf16 %v2184_v0, %v2184_v0  ;;  %2193 = vpow2.f32 %v401_v6  ;;  %v390_v12 = vsub.f32 %v334_v35, %v382_v4  ;;  %v56_v35 = vld [vmem:[%s2800_s2 + $0x8] sm:$0xf] }
 0x1b7   :  { %2195 = vpow2.f32 %v403_v7 }
 0x1b8   :  { %v408_v8 = vadd.f32 %v2184_v0, %v407_v3  ;;  %v2186_v9 = vpop.eup %2185  ;;  %v405_v18 = vmul.f32 1.442695, %v390_v12  ;;  %v463_v20 = vmul.bf16 %v455_v5, %v54_v11  ;;  %v60_v0 = vld [vmem:[%s2800_s2 + $0x18] sm:$0xf]  ;;  %v61_v12 = vld [vmem:[%s2800_s2 + $0x1c] sm:$0xf] }
 0x1b9   :  { %v2188_v13 = vpop.eup %2187  ;;  %v419_v16 = vrot.slane %v2186_v9, 4  ;;  %v457_v25 = vpack.c.bf16 %v2186_v9, %v2186_v9 }
 0x1ba   :  { %v409_v14 = vrot.slane %v408_v8, 2  ;;  %v413_v17 = vrot.slane %v2188_v13, 4  ;;  %v456_v22 = vpack.c.bf16 %v2188_v13, %v2188_v13  ;;  %2197 = vpow2.f32 %v405_v18 }
 0x1bb   :  { %v420_v21 = vadd.f32 %v2186_v9, %v419_v16  ;;  %v471_v40 = vunpack.c.l.bf16 %v463_v20  ;;  %v465_v48 = vmul.bf16 %v457_v25, %v56_v35 }
 0x1bc   :  { %v410_v19 = vadd.f32 %v409_v14, %v408_v8  ;;  %v2190_v24 = vpop.eup %2189  ;;  %v414_v27 = vadd.f32 %v2188_v13, %v413_v17  ;;  %v464_v37 = vmul.bf16 %v456_v22, %v55_v26 }
 0x1bd   :  { %v2192_v28 = vpop.eup %2191  ;;  %v421_v30 = vrot.slane %v420_v21, 2  ;;  %v425_v31 = vrot.slane %v2190_v24, 4  ;;  %v458_v32 = vpack.c.bf16 %v2190_v24, %v2190_v24  ;;  %v479_v60 = vrot.slane %v471_v40, 4 }
 0x1be   :  { %v411_v29 = vrot.slane %v410_v19, 1  ;;  %v415_v33 = vrot.slane %v414_v27, 2  ;;  %v431_v34 = vrot.slane %v2192_v28, 4  ;;  %v459_v43 = vpack.c.bf16 %v2192_v28, %v2192_v28 }
 0x1bf   :  { %v426_v38 = vadd.f32 %v2190_v24, %v425_v31  ;;  %v422_v46 = vadd.f32 %v421_v30, %v420_v21  ;;  %v466_v49 = vmul.bf16 %v458_v32, %v57_v36  ;;  %v472_v59 = vunpack.c.l.bf16 %v464_v37 }
 0x1c0   :  { %v416_v41 = vadd.f32 %v415_v33, %v414_v27  ;;  %v432_v42 = vadd.f32 %v2192_v28, %v431_v34  ;;  %v2194_v44 = vpop.eup %2193  ;;  %v412_v45 = vadd.f32 %v411_v29, %v410_v19  ;;  %v467_v2 = vmul.bf16 %v459_v43, %v58_v47 }
 0x1c1   :  { %v2196_v50 = vpop.eup %2195  ;;  %v427_v52 = vrot.slane %v426_v38, 2  ;;  %v437_v53 = vrot.slane %v2194_v44, 4  ;;  %v460_v56 = vpack.c.bf16 %v2194_v44, %v2194_v44  ;;  %v473_v7 = vunpack.c.l.bf16 %v465_v48 }
 0x1c2   :  { %v417_v51 = vrot.slane %v416_v41, 1  ;;  %v443_v57 = vrot.slane %v2196_v50, 4  ;;  %v461_v58 = vpack.c.bf16 %v2196_v50, %v2196_v50  ;;  %v433_v62 = vrot.slane %v432_v42, 2 }
 0x1c3   :  { %v438_v63 = vadd.f32 %v2194_v44, %v437_v53  ;;  %2199 = vrcp.f32 %v412_v45  ;;  %v468_v6 = vmul.bf16 %v460_v56, %v59_v54  ;;  %v423_v8 = vrot.slane %v422_v46, 1 }
 0x1c4   :  { %v418_v61 = vadd.f32 %v417_v51, %v416_v41  ;;  %v444_v3 = vadd.f32 %v2196_v50, %v443_v57  ;;  %v2198_v4 = vpop.eup %2197  ;;  %v428_v5 = vadd.f32 %v427_v52, %v426_v38  ;;  %v474_v11 = vunpack.c.l.bf16 %v466_v49 }
 0x1c5   :  { %v439_v9 = vrot.slane %v438_v63, 2  ;;  %v449_v14 = vrot.slane %v2198_v4, 4  ;;  %v462_v16 = vpack.c.bf16 %v2198_v4, %v2198_v4  ;;  %v469_v17 = vmul.bf16 %v461_v58, %v60_v0 }
 0x1c6   :  { %v445_v13 = vrot.slane %v444_v3, 2  ;;  %2201 = vrcp.f32 %v418_v61  ;;  %v434_v18 = vadd.f32 %v433_v62, %v432_v42  ;;  %v475_v19 = vunpack.c.l.bf16 %v467_v2 }
 0x1c7   :  { %v480_v20 = vadd.f32 %v479_v60, %v471_v40  ;;  %v440_v21 = vadd.f32 %v439_v9, %v438_v63  ;;  %v450_v22 = vadd.f32 %v2198_v4, %v449_v14  ;;  %v476_v24 = vunpack.c.l.bf16 %v468_v6 }
 0x1c8   :  { %v485_v25 = vrot.slane %v472_v59, 4  ;;  %v470_v26 = vmul.bf16 %v462_v16, %v61_v12  ;;  %v491_v28 = vrot.slane %v473_v7, 4  ;;  %v497_v29 = vrot.slane %v474_v11, 4 }
 0x1c9   :  { %v481_v27 = vrot.slane %v480_v20, 2  ;;  %v446_v30 = vadd.f32 %v445_v13, %v444_v3  ;;  %v451_v31 = vrot.slane %v450_v22, 2  ;;  %v477_v32 = vunpack.c.l.bf16 %v469_v17 }
 0x1ca   :  { %v486_v33 = vadd.f32 %v485_v25, %v472_v59  ;;  %v424_v34 = vadd.f32 %v423_v8, %v422_v46  ;;  %v429_v35 = vrot.slane %v428_v5, 1  ;;  %v435_v36 = vrot.slane %v434_v18, 1 }
 0x1cb   :  { %v492_v37 = vadd.f32 %v491_v28, %v473_v7  ;;  %v452_v38 = vadd.f32 %v451_v31, %v450_v22  ;;  %v482_v41 = vadd.f32 %v481_v27, %v480_v20  ;;  %v503_v40 = vrot.slane %v475_v19, 4 }
 0x1cc   :  { %v487_v42 = vrot.slane %v486_v33, 2  ;;  %v441_v43 = vrot.slane %v440_v21, 1  ;;  %v478_v44 = vunpack.c.l.bf16 %v470_v26  ;;  %v498_v45 = vadd.f32 %v497_v29, %v474_v11 }
 0x1cd   :  { %v509_v47 = vrot.slane %v476_v24, 4  ;;  %v2200_v48 = vpop.eup %2199  ;;  %v447_v49 = vrot.slane %v446_v30, 1  ;;  %v504_v51 = vadd.f32 %v503_v40, %v475_v19  ;;  %v515_v52 = vrot.slane %v477_v32, 4 }
 0x1ce   :  { %v488_v50 = vadd.f32 %v487_v42, %v486_v33  ;;  %v430_v53 = vadd.f32 %v429_v35, %v428_v5  ;;  %v493_v54 = vrot.slane %v492_v37, 2  ;;  %v453_v46 = vrot.slane %v452_v38, 1 }
 0x1cf   :  { %v510_v56 = vadd.f32 %v509_v47, %v476_v24  ;;  %v483_v57 = vrot.slane %v482_v41, 1  ;;  %v516_v59 = vadd.f32 %v515_v52, %v477_v32  ;;  %v436_v61 = vadd.f32 %v435_v36, %v434_v18 }
 0x1d0   :  { %v489_v58 = vrot.slane %v488_v50, 1  ;;  %v2202_v60 = vpop.eup %2201  ;;  %v499_v62 = vrot.slane %v498_v45, 2  ;;  %v521_v63 = vrot.slane %v478_v44, 4  ;;  %v442_v0 = vadd.f32 %v441_v43, %v440_v21 }
 0x1d1   :  { %v448_v2 = vadd.f32 %v447_v49, %v446_v30  ;;  %v505_v3 = vrot.slane %v504_v51, 2  ;;  %2203 = vrcp.f32 %v424_v34  ;;  %v494_v7 = vadd.f32 %v493_v54, %v492_v37 }
 0x1d2   :  { %v490_v6 = vadd.f32 %v489_v58, %v488_v50  ;;  %v511_v4 = vrot.slane %v510_v56, 2  ;;  %v522_v8 = vadd.f32 %v521_v63, %v478_v44  ;;  %v454_v9 = vadd.f32 %v453_v46, %v452_v38 }
 0x1d3   :  { %v484_v5 = vadd.f32 %v483_v57, %v482_v41  ;;  %v517_v11 = vrot.slane %v516_v59, 2  ;;  %2205 = vrcp.f32 %v430_v53  ;;  %v500_v12 = vadd.f32 %v499_v62, %v498_v45 }
 0x1d4   :  { %v523_v13 = vrot.slane %v522_v8, 2  ;;  %2207 = vrcp.f32 %v436_v61  ;;  %v536_v14 = vmul.f32 %v2202_v60, %v490_v6  ;;  %v506_v16 = vadd.f32 %v505_v3, %v504_v51 }
 0x1d5   :  { %2209 = vrcp.f32 %v442_v0  ;;  %v535_v17 = vmul.f32 %v2200_v48, %v484_v5  ;;  %v495_v18 = vrot.slane %v494_v7, 1  ;;  %v512_v19 = vadd.f32 %v511_v4, %v510_v56  ;;  %v2079_v5 = vld [vmem:[%s2805_s7 + $0x8] ss:$12 sps:$4 sm:$0xff]  }
 0x1d6   :  { %2211 = vrcp.f32 %v448_v2  ;;  %v518_v20 = vadd.f32 %v517_v11, %v516_v59  ;;  %v544_v21 = vpack.c.bf16 %v536_v14, %v536_v14  ;;  %v501_v22 = vrot.slane %v500_v12, 1  ;;  %v2083_v14 = vld [vmem:[%s2805_s7 + $0x20] ss:$12 sps:$4 sm:$0xff]  }
 0x1d7   :  { %2213 = vrcp.f32 %v454_v9  ;;  %v524_v24 = vadd.f32 %v523_v13, %v522_v8  ;;  %v507_v25 = vrot.slane %v506_v16, 1  ;;  %v543_v26 = vpack.c.bf16 %v535_v17, %v535_v17  ;;  %v2076_v8 = vld [vmem:[%s2805_s7] ss:$12 sps:$4 sm:$0xff]   ;;  %v2080_v13 = vld [vmem:[%s2805_s7 + $0x18] ss:$12 sps:$4 sm:$0xff]  }
 0x1d8   :  { %v496_v27 = vadd.f32 %v495_v18, %v494_v7  ;;  %v513_v28 = vrot.slane %v512_v19, 1  ;;  %v519_v30 = vrot.slane %v518_v20, 1  ;;  %v624_v31 = vunpack.c.l.b16 %v544_v21  ;;  %v2084_v17 = vld [vmem:[%s2805_s7 + $0x30] ss:$12 sps:$4 sm:$0xff]   ;;  %v2087_v18 = vld [vmem:[%s2805_s7 + $0x38] ss:$12 sps:$4 sm:$0xff]  }
 0x1d9   :  { %v502_v32 = vadd.f32 %v501_v22, %v500_v12  ;;  %v525_v33 = vrot.slane %v524_v24, 1  ;;  %v508_v36 = vadd.f32 %v507_v25, %v506_v16  ;;  %v623_v37 = vunpack.c.l.b16 %v543_v26  ;;  %v2082_v12 = vld [vmem:[%s2805_s7 + $0x1c] ss:$12 sps:$4 sm:$0xff]   ;;  %v2086_v16 = vld [vmem:[%s2805_s7 + $0x34] ss:$12 sps:$4 sm:$0xff]  }
 0x1da   :  { %v514_v41 = vadd.f32 %v513_v28, %v512_v19  ;;  %v520_v44 = vadd.f32 %v519_v30, %v518_v20  ;;  %v2090_v19 = vld [vmem:[%s2805_s7 + $0x4c] ss:$12 sps:$4 sm:$0xff]   ;;  %v2088_v20 = vld [vmem:[%s2805_s7 + $0x48] ss:$12 sps:$4 sm:$0xff]   ;;  %v2091_v21 = vld [vmem:[%s2805_s7 + $0x50] ss:$12 sps:$4 sm:$0xff]  }
 0x1db   :  { %v2204_v29 = vpop.eup %2203  ;;  %v632_v47 = vsel %vm631_vm1, %v624_v31, %v623_v37  ;;  %v526_v49 = vadd.f32 %v525_v33, %v524_v24  ;;  %v2094_v22 = vld [vmem:[%s2805_s7 + $0x64] ss:$12 sps:$4 sm:$0xff]   ;;  %v2092_v24 = vld [vmem:[%s2805_s7 + $0x60] ss:$12 sps:$4 sm:$0xff]   ;;  %v2095_v25 = vld [vmem:[%s2805_s7 + $0x68] ss:$12 sps:$4 sm:$0xff]  }
 0x1dc   :  { %v537_v34 = vmul.f32 %v2204_v29, %v496_v27  ;;  %v2098_v26 = vld [vmem:[%s2805_s7 + $0x7c] ss:$12 sps:$4 sm:$0xff]   ;;  %v2096_v27 = vld [vmem:[%s2805_s7 + $0x78] ss:$12 sps:$4 sm:$0xff]   ;;  %v2099_v28 = vld [vmem:[%s2805_s7 + $0x80] ss:$12 sps:$4 sm:$0xff]  }
 0x1dd   :  { %v2206_v35 = vpop.eup %2205  ;;  %v2102_v29 = vld [vmem:[%s2805_s7 + $0x94] ss:$12 sps:$4 sm:$0xff]   ;;  %v2100_v30 = vld [vmem:[%s2805_s7 + $0x90] ss:$12 sps:$4 sm:$0xff]   ;;  %v2103_v31 = vld [vmem:[%s2805_s7 + $0x98] ss:$12 sps:$4 sm:$0xff]  }
 0x1de   :  { %v2208_v38 = vpop.eup %2207  ;;  %v538_v42 = vmul.f32 %v2206_v35, %v502_v32  ;;  %v545_v40 = vpack.c.bf16 %v537_v34, %v537_v34  ;;  %v2106_v32 = vld [vmem:[%s2805_s7 + $0xac] ss:$12 sps:$4 sm:$0xff]   ;;  %v2104_v33 = vld [vmem:[%s2805_s7 + $0xa8] ss:$12 sps:$4 sm:$0xff]   ;;  %v2107_v34 = vld [vmem:[%s2805_s7 + $0xb0] ss:$12 sps:$4 sm:$0xff]  }
 0x1df   :  { %v2210_v43 = vpop.eup %2209  ;;  %v539_v45 = vmul.f32 %v2208_v38, %v508_v36  ;;  %v2110_v35 = vld [vmem:[%s2807_s9 + $0x4] ss:$12 sps:$4 sm:$0xff]   ;;  %v2108_v36 = vld [vmem:[%s2807_s9] ss:$12 sps:$4 sm:$0xff]   ;;  %v2129_v37 = vld [vmem:[%s2807_s9 + $0x8] ss:$12 sps:$4 sm:$0xff]  }
 0x1e0   :  { %v2212_v48 = vpop.eup %2211  ;;  %v540_v50 = vmul.f32 %v2210_v43, %v514_v41  ;;  %v546_v51 = vpack.c.bf16 %v538_v42, %v538_v42  ;;  %v625_v52 = vunpack.c.l.b16 %v545_v40  ;;  %v2113_v38 = vld [vmem:[%s2807_s9 + $0x1c] ss:$12 sps:$4 sm:$0xff]   ;;  %v2111_v41 = vld [vmem:[%s2807_s9 + $0x18] ss:$12 sps:$4 sm:$0xff]   ;;  %v2133_v42 = vld [vmem:[%s2807_s9 + $0x20] ss:$12 sps:$4 sm:$0xff]  }
 0x1e1   :  { %v2214_v53 = vpop.eup %2213  ;;  %v541_v54 = vmul.f32 %v2212_v48, %v520_v44  ;;  %v547_v56 = vpack.c.bf16 %v539_v45, %v539_v45  ;;  %v2116_v40 = vld [vmem:[%s2807_s9 + $0x34] ss:$12 sps:$4 sm:$0xff]   ;;  %v2134_v43 = vld [vmem:[%s2807_s9 + $0x38] ss:$12 sps:$4 sm:$0xff]   ;;  %v2135_v45 = vld [vmem:[%s2807_s9 + $0x50] ss:$12 sps:$4 sm:$0xff]  }
 0x1e2   :  { %v542_v46 = vmul.f32 %v2214_v53, %v526_v49  ;;  %v548_v57 = vpack.c.bf16 %v540_v50, %v540_v50  ;;  %v626_v58 = vunpack.c.l.b16 %v546_v51  ;;  %v634_v59 = vsel %vm633_vm2, %v625_v52, %v632_v47  ;;  %v2119_v44 = vld [vmem:[%s2807_s9 + $0x4c] ss:$12 sps:$4 sm:$0xff]   ;;  %v2122_v47 = vld [vmem:[%s2807_s9 + $0x64] ss:$12 sps:$4 sm:$0xff]   ;;  %v2136_v49 = vld [vmem:[%s2807_s9 + $0x68] ss:$12 sps:$4 sm:$0xff]  }
 0x1e3   :  { %v549_v60 = vpack.c.bf16 %v541_v54, %v541_v54  ;;  %v627_v61 = vunpack.c.l.b16 %v547_v56  ;;  %v2120_v48 = vld [vmem:[%s2807_s9 + $0x60] ss:$12 sps:$4 sm:$0xff]   ;;  %v2125_v50 = vld [vmem:[%s2807_s9 + $0x7c] ss:$12 sps:$4 sm:$0xff]   ;;  %v2123_v51 = vld [vmem:[%s2807_s9 + $0x78] ss:$12 sps:$4 sm:$0xff]  }
 0x1e4   :  { %v550_v62 = vpack.c.bf16 %v542_v46, %v542_v46  ;;  %v628_v63 = vunpack.c.l.b16 %v548_v57  ;;  %v636_v0 = vsel %vm635_vm3, %v626_v58, %v634_v59  ;;  %v2137_v52 = vld [vmem:[%s2807_s9 + $0x80] ss:$12 sps:$4 sm:$0xff]   ;;  %v2126_v54 = vld [vmem:[%s2807_s9 + $0x90] ss:$12 sps:$4 sm:$0xff]   ;;  %v2138_v56 = vld [vmem:[%s2807_s9 + $0x98] ss:$12 sps:$4 sm:$0xff]  }
 0x1e5   :  { %v629_v2 = vunpack.c.l.b16 %v549_v60  ;;  %v638_v3 = vsel %vm637_vm4, %v627_v61, %v636_v0  ;;  %v2128_v53 = vld [vmem:[%s2807_s9 + $0x94] ss:$12 sps:$4 sm:$0xff]   ;;  %v2132_v46 = vld [vmem:[%s2807_s9 + $0xac] ss:$12 sps:$4 sm:$0xff]   ;;  %v2139_v58 = vld [vmem:[%s2807_s9 + $0xb0] ss:$12 sps:$4 sm:$0xff]  }
 0x1e6   :  { %v630_v6 = vunpack.c.l.b16 %v550_v62  ;;  %v640_v7 = vsel %vm639_vm5, %v628_v63, %v638_v3  ;;  %v2130_v57 = vld [vmem:[%s2807_s9 + $0xa8] ss:$12 sps:$4 sm:$0xff]   ;;  %v2140_v59 = vld [vmem:[%s2809_s11 + $0x40] sm:$0xff]  }
 0x1e7   :  { %v642_v4 = vsel %vm641_vm6, %v629_v2, %v640_v7  ;;  %v2141_v60 = vld [vmem:[%s2809_s11] sm:$0xff]   ;;  %v2144_v62 = vld [vmem:[%s2809_s11 + $0x8] sm:$0xff]   ;;  %v2146_v0 = vld [vmem:[%s2809_s11 + $0x50] sm:$0xff]  }
 0x1e8   :  { %v644_v9 = vsel %vm643_vm7, %v630_v6, %v642_v4  ;;  %v2142_v61 = vld [vmem:[%s2809_s11 + $0x80] sm:$0xff]   ;;  %v2145_v63 = vld [vmem:[%s2809_s11 + $0x88] sm:$0xff]   ;;  %v2147_v2 = vld [vmem:[%s2809_s11 + $0x10] sm:$0xff]  }
 0x1e9   :  { %v645_v11 = vpack.c.b16 %v644_v9, %v644_v9  ;;  %v2148_v3 = vld [vmem:[%s2809_s11 + $0x90] sm:$0xff]   ;;  %v2149_v6 = vld [vmem:[%s2809_s11 + $0x58] sm:$0xff]   ;;  %v2153_v9 = vld [vmem:[%s2809_s11 + $0x20] sm:$0xff]  }
 0x1ea   :  { %v2150_v7 = vld [vmem:[%s2809_s11 + $0x18] sm:$0xff]  }
 0x1eb   :  { %808 = vmatmul.mubr.bf16.vlgmr.msra.gmra.mrb[0].mxu1 %v645_v11  ;;  %1392 = vst [vmem:[#allocation2 + $0x4] sm:$0xf] %v645_v11  ;;  %1956 = vmatmul.mubr.bf16.vlgmr.msra.gmra.mrb[4].mxu0 %v645_v11  ;;  %v2151_v4 = vld [vmem:[%s2809_s11 + $0x98] sm:$0xff]   ;;  %v2155_v11 = vld [vmem:[%s2809_s11 + $0x68] sm:$0xff]  }
 0x1ec   :  { %985 = vmatpush1.bf16.msra.mxu1 %v2076_v8  ;;  %1960 = vmatpush3.bf16.msra.mxu0 %v2079_v5  ;;  %v2152_v8 = vld [vmem:[%s2809_s11 + $0x60] sm:$0xff]  }
 0x1ed   :  { %986 = vmatprep.subr.bf16.mxu1 %v2082_v12  ;;  %1961 = vmatprep.subr.bf16.mxu0 %v2250_v1  ;;  %v2154_v5 = vld [vmem:[%s2809_s11 + $0xa0] sm:$0xff]   ;;  %v2156_v12 = vld [vmem:[%s2809_s11 + $0x28] sm:$0xff]  }
 0x1ee   :  { %1975 = vmatprep.mubr.msk.bf16.mxu0 %vm2251_vm0, %v2250_v1  ;;  %1016 = vmatprep.mubr.bf16.mxu1 %v2253_v39 }
 0x1f0   :  { %987 = vmatpush1.bf16.msra.mxu1 %v2080_v13  ;;  %1962 = vmatpush3.bf16.msra.mxu0 %v2083_v14  ;;  %v2158_v13 = vld [vmem:[%s2809_s11 + $0x70] sm:$0xff]   ;;  %v2157_v14 = vld [vmem:[%s2809_s11 + $0xa8] sm:$0xff]  }
 0x1f1   :  { %988 = vmatprep.subr.bf16.mxu1 %v2086_v16  ;;  %1963 = vmatprep.subr.bf16.mxu0 %v2250_v1  ;;  %v2159_v16 = vld [vmem:[%s2809_s11 + $0x30] sm:$0xff]  }
 0x1f4   :  { %989 = vmatpush1.bf16.msra.mxu1 %v2084_v17  ;;  %1964 = vmatpush3.bf16.msra.mxu0 %v2087_v18  ;;  %v2161_v17 = vld [vmem:[%s2809_s11 + $0x78] sm:$0xff]   ;;  %v2160_v18 = vld [vmem:[%s2809_s11 + $0xb0] sm:$0xff]  }
 0x1f5   :  { %990 = vmatprep.subr.bf16.mxu1 %v2090_v19  ;;  %1965 = vmatprep.subr.bf16.mxu0 %v2250_v1  ;;  %v2162_v19 = vld [vmem:[%s2809_s11 + $0x38] sm:$0xff]  }
 0x1f8   :  { %991 = vmatpush1.bf16.msra.mxu1 %v2088_v20  ;;  %1966 = vmatpush3.bf16.msra.mxu0 %v2091_v21  ;;  %v2165_v20 = vld [vmem:[%s2809_s11 + $0xb8] sm:$0xff]  }
 0x1f9   :  { %992 = vmatprep.subr.bf16.mxu1 %v2094_v22  ;;  %1967 = vmatprep.subr.bf16.mxu0 %v2250_v1  ;;  %v2166_v22 = vld [vmem:[#allocation2 + $0x8] ss:$0 sps:$4 sm:$0xff]  }
 0x1fc   :  { %993 = vmatpush1.bf16.msra.mxu1 %v2092_v24  ;;  %1968 = vmatpush3.bf16.msra.mxu0 %v2095_v25 }
 0x1fd   :  { %994 = vmatprep.subr.bf16.mxu1 %v2098_v26  ;;  %1969 = vmatprep.subr.bf16.mxu0 %v2250_v1 }
 0x200   :  { %995 = vmatpush1.bf16.msra.mxu1 %v2096_v27  ;;  %1970 = vmatpush3.bf16.msra.mxu0 %v2099_v28 }
 0x201   :  { %996 = vmatprep.subr.bf16.mxu1 %v2102_v29  ;;  %1971 = vmatprep.subr.bf16.mxu0 %v2250_v1 }
 0x204   :  { %997 = vmatpush1.bf16.msra.mxu1 %v2100_v30  ;;  %1972 = vmatpush3.bf16.msra.mxu0 %v2103_v31 }
 0x205   :  { %998 = vmatprep.subr.bf16.mxu1 %v2106_v32  ;;  %1973 = vmatprep.subr.bf16.mxu0 %v2250_v1  ;;  %v1117_v32 = vld [vmem:[%s2808_s10] sm:$0x7] }
 0x208   :  { %999 = vmatpush1.bf16.msra.mxu1 %v2104_v33  ;;  %1974 = vmatpush3.bf16.msra.mxu0 %v2107_v34  ;;  %v1073_v33 = vsub.s32 1, %v2373_v15 }
 0x209   :  { %1262 = vmatprep.subr.bf16.mxu1 %v2110_v35  ;;  %1979 = vmatprep.subr.bf16.mxu0 %v2250_v1  ;;  %v1122_v35 = vrot.slane %v1117_v32, %v2383_v23 }
 0x20b   :  { %1976 = vmatmul.mubr.bf16.vlgmr.msra.gmra.mrb[8].mxu0 %v2492_v55  ;;  %1017 = vmatmul.mubr.bf16.vlgmr.msra.gmra.mrb[0].mxu1 %v2492_v55  ;;  %v2114_v55 = vld [vmem:[%s2807_s9 + $0x30] ss:$12 sps:$4 sm:$0xff]  }
 0x20c   :  { %1263 = vmatpush1.bf16.msra.mxu1 %v2108_v36  ;;  %1980 = vmatpush3.bf16.msra.mxu0 %v2129_v37  ;;  %v1126_v37 = vrot.slane %v1117_v32, %v1073_v33 }
 0x20d   :  { %1264 = vmatprep.subr.bf16.mxu1 %v2113_v38  ;;  %1981 = vmatprep.subr.bf16.mxu0 %v2250_v1 }
 0x20e   :  { %1294 = vmatprep.mubr.bf16.mxu1 %v2253_v39  ;;  %1995 = vmatprep.mubr.msk.bf16.mxu0 %vm2251_vm0, %v2250_v1  ;;  %v2117_v39 = vld [vmem:[%s2807_s9 + $0x48] ss:$12 sps:$4 sm:$0xff]  }
 0x210   :  { %1265 = vmatpush1.bf16.msra.mxu1 %v2111_v41  ;;  %1982 = vmatpush3.bf16.msra.mxu0 %v2133_v42 }
 0x211   :  { %1266 = vmatprep.subr.bf16.mxu1 %v2116_v40  ;;  %1983 = vmatprep.subr.bf16.mxu0 %v2250_v1 }
 0x214   :  { %1267 = vmatpush1.bf16.msra.mxu1 %v2114_v55  ;;  %1984 = vmatpush3.bf16.msra.mxu0 %v2134_v43 }
 0x215   :  { %1268 = vmatprep.subr.bf16.mxu1 %v2119_v44  ;;  %1985 = vmatprep.subr.bf16.mxu0 %v2250_v1 }
 0x218   :  { %1269 = vmatpush1.bf16.msra.mxu1 %v2117_v39  ;;  %1986 = vmatpush3.bf16.msra.mxu0 %v2135_v45 }
 0x219   :  { %1270 = vmatprep.subr.bf16.mxu1 %v2122_v47  ;;  %1987 = vmatprep.subr.bf16.mxu0 %v2250_v1 }
 0x21c   :  { %1271 = vmatpush1.bf16.msra.mxu1 %v2120_v48  ;;  %1988 = vmatpush3.bf16.msra.mxu0 %v2136_v49 }
 0x21d   :  { %1272 = vmatprep.subr.bf16.mxu1 %v2125_v50  ;;  %1989 = vmatprep.subr.bf16.mxu0 %v2250_v1 }
 0x220   :  { %1273 = vmatpush1.bf16.msra.mxu1 %v2123_v51  ;;  %1990 = vmatpush3.bf16.msra.mxu0 %v2137_v52 }
 0x221   :  { %1274 = vmatprep.subr.bf16.mxu1 %v2128_v53  ;;  %1991 = vmatprep.subr.bf16.mxu0 %v2250_v1  ;;  %v1077_v53 = vsub.s32 2, %v2373_v15 }
 0x224   :  { %1275 = vmatpush1.bf16.msra.mxu1 %v2126_v54  ;;  %1992 = vmatpush3.bf16.msra.mxu0 %v2138_v56  ;;  %v1130_v54 = vrot.slane %v1117_v32, %v1077_v53 }
 0x225   :  { %1276 = vmatprep.subr.bf16.mxu1 %v2132_v46  ;;  %1993 = vmatprep.subr.bf16.mxu0 %v2250_v1 }
 0x228   :  { %1277 = vmatpush1.bf16.msra.mxu1 %v2130_v57  ;;  %1994 = vmatpush3.bf16.msra.mxu0 %v2139_v58 }
 0x229   :  { %1999 = vmatprep.subr.bf16.mxu0 %v2250_v1  ;;  %1888 = vmatprep.subr.bf16.mxu1 %v2140_v59 }
 0x22b   :  { %1295 = vmatmul.mubr.bf16.vlgmr.msra.gmra.mrb[0].mxu1 %v2367_v10  ;;  %1996 = vmatmul.mubr.bf16.vlgmr.msra.gmra.mrb[12].mxu0 %v2367_v10  ;;  %v2143_v10 = vld [vmem:[%s2809_s11 + $0x48] sm:$0xff]  }
 0x22c   :  { %2015 = vmatprep.mubr.msk.bf16.mxu0 %vm2251_vm0, %v2250_v1  ;;  %1889 = vmatpush3.bf16.msra.mxu1 %v2141_v60 }
 0x22d   :  { %2000 = vmatpush3.bf16.msra.mxu0 %v2142_v61  ;;  %1890 = vmatprep.subr.bf16.mxu1 %v2143_v10 }
 0x22e   :  { %2001 = vmatprep.subr.bf16.mxu0 %v2250_v1 }
 0x230   :  { %1891 = vmatpush3.bf16.msra.mxu1 %v2144_v62 }
 0x231   :  { %2002 = vmatpush3.bf16.msra.mxu0 %v2145_v63  ;;  %1892 = vmatprep.subr.bf16.mxu1 %v2146_v0 }
 0x232   :  { %2003 = vmatprep.subr.bf16.mxu0 %v2250_v1 }
 0x234   :  { %1893 = vmatpush3.bf16.msra.mxu1 %v2147_v2  ;;  %v2225_v2 = vld [vmem:[%s2799_s1] sm:$0xff] }
 0x235   :  { %2004 = vmatpush3.bf16.msra.mxu0 %v2148_v3  ;;  %1894 = vmatprep.subr.bf16.mxu1 %v2149_v6 }
 0x236   :  { %2005 = vmatprep.subr.bf16.mxu0 %v2250_v1 }
 0x238   :  { %1895 = vmatpush3.bf16.msra.mxu1 %v2150_v7 }
 0x239   :  { %2006 = vmatpush3.bf16.msra.mxu0 %v2151_v4  ;;  %1896 = vmatprep.subr.bf16.mxu1 %v2152_v8 }
 0x23a   :  { %2007 = vmatprep.subr.bf16.mxu0 %v2250_v1 }
 0x23c   :  { %1897 = vmatpush3.bf16.msra.mxu1 %v2153_v9 }
 0x23d   :  { %1898 = vmatprep.subr.bf16.mxu1 %v2155_v11  ;;  %2008 = vmatpush3.bf16.msra.mxu0 %v2154_v5 }
 0x23e   :  { %2009 = vmatprep.subr.bf16.mxu0 %v2250_v1 }
 0x240   :  { %1899 = vmatpush3.bf16.msra.mxu1 %v2156_v12 }
 0x241   :  { %1900 = vmatprep.subr.bf16.mxu1 %v2158_v13  ;;  %2010 = vmatpush3.bf16.msra.mxu0 %v2157_v14 }
 0x242   :  { %2011 = vmatprep.subr.bf16.mxu0 %v2250_v1 }
 0x244   :  { %1901 = vmatpush3.bf16.msra.mxu1 %v2159_v16 }
 0x245   :  { %1902 = vmatprep.subr.bf16.mxu1 %v2161_v17  ;;  %2012 = vmatpush3.bf16.msra.mxu0 %v2160_v18  ;;  %v1797_v17 = vld [vmem:[%s2810_s12] ss:$0 sm:$0xff] }
 0x246   :  { %2013 = vmatprep.subr.bf16.mxu0 %v2250_v1  ;;  %v1065_v1 = vld [vmem:[%s2806_s8] sm:$0x7] }
 0x247   :  { %v1070_v34 = vrot.slane %v1065_v1, %v2383_v23  ;;  %v1074_v36 = vrot.slane %v1065_v1, %v1073_v33  ;;  %v1078_v46 = vrot.slane %v1065_v1, %v1077_v53 }
 0x248   :  { %1903 = vmatpush3.bf16.msra.mxu1 %v2162_v19 }
 0x249   :  { %2014 = vmatpush3.bf16.msra.mxu0 %v2165_v20  ;;  %v2019_v38 = vadd.f32 %v1122_v35, %v1070_v34  ;;  %v2021_v42 = vadd.f32 %v1126_v37, %v1074_v36 }
 0x24c   :  { %2016 = vmatmul.mubr.bf16.vlgmr.msra.gmra.mrb[16].mxu0 %v2166_v22 }
 0x2be   :  { %v850_v21 = vpop.f32.mrb[4].mxu0 }
 0x2bf   :  { %v1957_v24 = vpop.f32.mrb[5].mxu0 }
 0x2c0   :  { %v853_v25 = vpop.f32.mrb[6].mxu0 }
 0x2c1   :  { %v1958_v26 = vpop.f32.mrb[7].mxu0 }
 0x2de   :  { %v1059_v27 = vpop.f32.mrb[8].mxu0 }
 0x2df   :  { %v1060_v28 = vadd.f32 %v1059_v27, %v850_v21  ;;  %v1977_v29 = vpop.f32.mrb[9].mxu0 }
 0x2e0   :  { %v1062_v30 = vpop.f32.mrb[10].mxu0 }
 0x2e1   :  { %v1978_v31 = vpop.f32.mrb[11].mxu0  ;;  %v1084_v60 = vadd.f32 %v1078_v46, %v1060_v28 }
 0x2fe   :  { %v1296_v41 = vpop.f32.mrb[0].mxu1  ;;  %v1337_v40 = vpop.f32.mrb[12].mxu0 }
 0x2ff   :  { %v2020_v55 = vadd.f32 %v2019_v38, %v1296_v41  ;;  %v1298_v43 = vpop.f32.mrb[1].mxu1  ;;  %v1997_v44 = vpop.f32.mrb[13].mxu0  ;;  %v1338_v58 = vadd.f32 %v1337_v40, %v1130_v54 }
 0x300   :  { %v1300_v39 = vpop.f32.mrb[2].mxu1  ;;  %v1340_v45 = vpop.f32.mrb[14].mxu0  ;;  %v2022_v50 = vadd.f32 %v2021_v42, %v1298_v43 }
 0x301   :  { %v1787_v47 = vmul.f32 -1.442695, %v2020_v55  ;;  %v1301_v48 = vpop.f32.mrb[3].mxu1  ;;  %v1998_v49 = vpop.f32.mrb[15].mxu0 }
 0x302   :  { %v1788_v51 = vmul.f32 -1.442695, %v2022_v50 }
 0x303   :  { %2215 = vpow2.f32 %v1787_v47 }
 0x304   :  { %2217 = vpow2.f32 %v1788_v51 }
 0x30d   :  { %v2216_v52 = vpop.eup %2215 }
 0x30e   :  { %v1347_v23 = vadd.f32 1.0, %v2216_v52  ;;  %v2218_v56 = vpop.eup %2217 }
 0x30f   :  { %v1354_v57 = vadd.f32 1.0, %v2218_v56 }
 0x310   :  { %2219 = vrcp.f32 %v1347_v23 }
 0x311   :  { %2221 = vrcp.f32 %v1354_v57 }
 0x31a   :  { %v2220_v59 = vpop.eup %2219 }
 0x31b   :  { %v1357_v61 = vmul.f32 %v2220_v59, %v1338_v58  ;;  %v2222_v62 = vpop.eup %2221 }
 0x31c   :  { %v1360_v63 = vsub.f32 1.0, %v2222_v62  ;;  %v1362_v3 = vmul.f32 %v2225_v2, %v2222_v62 }
 0x31d   :  { %v1358_v10 = vadd.f32 %v1357_v61, %v1084_v60 }
 0x31f   :  { %2223 = vtanh.f32 %v1358_v10  ;;  %v1680_v5 = vpop.f32.mrb[16].mxu0 }
 0x320   :  { %v2017_v11 = vpop.f32.mrb[17].mxu0 }
 0x321   :  { %v1683_v12 = vpop.f32.mrb[18].mxu0 }
 0x322   :  { %v2018_v13 = vpop.f32.mrb[19].mxu0 }
 0x329   :  { %v2224_v0 = vpop.eup %2223 }
 0x32a   :  { %v1361_v15 = vmul.f32 %v2224_v0, %v1360_v63 }
 0x32c   :  { %v1363_v6 = vadd.f32 %v1362_v3, %v1361_v15 }
 0x32e   :  { %1364 = vst [vmem:[%s2811_s13] sm:$0xff] %v1363_v6  ;;  %v1365_v7 = vpack.c.bf16 %v1363_v6, %v1363_v6  ;;  %s2254_s13 = smov [#allocation3]  }
 0x32f   :  { %s1695_s7 = sshll.u32 %s2254_s13, 4  ;;  %s1696_s7 = int_to_ptr.vmem [resolvable:$true] %s1695_s7 }
 0x330   :  { %1366 = vst [vmem:[#allocation2] sm:$0xf] %v1365_v7  ;;  %s2226_s20 = scalar_lea.vmem %s1696_s7, 128  ;;  %p2231_p1 = scmp.lt.s32.totalorder %s1696_s7, %s1696_s7 }
 0x331   :  { %p2227_p0 = scmp.ne.s32.totalorder %s1696_s7, %s2226_s20  ;;  %p2232_p2 = scmp.lt.s32.totalorder %s2226_s20, %s2226_s20 }
 0x333   :  { %p2233_p3 = por %p2232_p2, %p2231_p1 }
 0x335   :  { %p2234_p4 = pnand %p2233_p3, %p2227_p0 }
 0x337   :  { %v1394_v4 = vld [vmem:[#allocation2] sm:$0xff] }
 0x338   :  { %v1798_v8 = vcombine.low %v1394_v4, %v1394_v4  ;;  %v1799_v9 = vcombine.high %v1394_v4, %v1394_v4 }
 0x33a   :  { %1638 = vmatprep.mubr.bf16.mxu1 %v1799_v9 }
 0x33b   :  { %1639 = vmatmul.mubr.bf16.vlgmr.msra.gmra.mrb[4].mxu1 %v1798_v8 }
 0x40e   :  { %v1904_v14 = vpop.f32.mrb[4].mxu1 }
 0x40f   :  { %v1905_v16 = vpop.f32.mrb[5].mxu1 }
 0x410   :  { %v1906_v18 = vadd.f32 %v1905_v16, %v1904_v14  ;;  %v1907_v19 = vpop.f32.mrb[6].mxu1 }
 0x411   :  { %v1908_v20 = vpop.f32.mrb[7].mxu1 }
 0x412   :  { %v1641_v21 = vadd.f32 %v1906_v18, %v1797_v17 }
 0x414   :  { %v1681_v22 = vadd.f32 %v1680_v5, %v1641_v21 }
 0x416   :  { %1686 = vst [vmem:[#allocation3] sm:$0xff] %v1681_v22 }
 0x417   :  { %2237 = shalt.err (!%p2234_p4)
}
 0x418   :  { %s2238_s12 = scalar_lea.hbm %s2812_s14, 128 }
 0x419   :  { %p2239_p5 = scmp.ne.s32.totalorder %s2812_s14, %s2238_s12  ;;  %p2242_p6 = scmp.lt.u32.totalorder %s2238_s12, %s2812_s14 }
 0x41b   :  { %p2244_p7 = pnand %p2242_p6, %p2239_p5 }
 0x41d   :  { %2247 = shalt.err (!%p2244_p7)
}
 0x41e   :  { %1698 = dma.vmem_to_hbm [thread:$0]  %s1696_s7, 128, %s2812_s14, [#allocation4]  }
 0x41f   :  { %2248 = dma.done.wait [#allocation4], 128  }
 0x420   :  { %2249 = vsyncadd [#allocation4], 4294967168 }
 0x421   :  { %1704 = vsyncpa [#allocation4], 1 }

</bundles_post_ra>
